<compile_context>
chip_gen: v6e
topology: v6e:2x2x1
jax: 0.10.0
libtpu: 0.0.40
codegen_flags: <defaults>
</compile_context>

<pallas_src>
import jax
import jax.numpy as jnp
from jax.experimental import pallas as pl
from jax.experimental.pallas import tpu as pltpu


# --------------------------- fused Pallas kernel ----------------------------

def _make_fused_kernel(num_hidden, g_out, hidden_dim, out_pad, approx_recip):
    """Fused predictor head for one row tile:
       mean-normalize -> graph Linear + ReLU
       -> num_hidden x (Linear -> LayerNorm -> Dropout[eval, identity])
       -> final (zero-padded, lane-dense) Linear."""

    def kernel(agg_ref, deg_ref, pack_ref, wg_ref, *rest):
        o_ref = rest[-1]
        w_refs = rest[:-1]          # num_hidden hidden weights + final weight

        # mean-neighbor normalization: reciprocal of the (tm, 1) degree column
        # (EUP slot) + broadcast multiply instead of a full-tile divide.
        inv_deg = pl.reciprocal(jnp.maximum(deg_ref[...], 1.0),
                                approx=approx_recip)
        x = agg_ref[...] * inv_deg.astype(agg_ref.dtype)

        # graph projection + bias + ReLU (f32 accumulation)
        h = jnp.dot(x.astype(wg_ref.dtype), wg_ref[...],
                    preferred_element_type=jnp.float32)
        h = jnp.maximum(h + pack_ref[0:1, :g_out], 0.0)

        # hidden layers: Linear -> LayerNorm (f32 stats) -> Dropout (identity)
        for i in range(num_hidden):
            w_ref = w_refs[i]
            r = 1 + 3 * i
            b    = pack_ref[r:r + 1, :hidden_dim]
            g    = pack_ref[r + 1:r + 2, :hidden_dim]
            beta = pack_ref[r + 2:r + 3, :hidden_dim]
            y = jnp.dot(h.astype(w_ref.dtype), w_ref[...],
                        preferred_element_type=jnp.float32) + b
            mu = jnp.mean(y, axis=-1, keepdims=True)
            c = y - mu
            var = jnp.mean(c * c, axis=-1, keepdims=True)
            inv = jax.lax.rsqrt(var + 1e-5)            # torch eps = 1e-5
            h = c * (inv * g) + beta                   # folded scale
            # Dropout: identity in eval mode.

        # final Linear, zero-padded to a lane-dense (>=128-wide) output
        w_last = w_refs[num_hidden]
        b_last = pack_ref[1 + 3 * num_hidden:2 + 3 * num_hidden, :out_pad]
        out = jnp.dot(h.astype(w_last.dtype), w_last[...],
                      preferred_element_type=jnp.float32) + b_last
        o_ref[...] = out.astype(o_ref.dtype)

    return kernel


# ------------------------------ Pallas wrapper -------------------------------

def _round_up(x, m):
    return ((x + m - 1) // m) * m


def _num_tensorcores_per_chip():
    # v7x has 2 TensorCores per chip; v5e/v6e have 1.
    try:
        kind = jax.devices()[0].device_kind.lower()
        if "v7" in kind:
            return 2
    except Exception:
        pass
    return 1


def _choose_row_tile(n, num_cores):
    """Row tile (multiple of 16 rows for bf16 sublane packing).
    Single-TC chips: the grid is a sequential loop -> prefer ONE big step.
    Dual-TC (v7x): keep >= 2 steps so "parallel" shards rows across cores."""
    if num_cores >= 2:
        if n <= 1024:
            return max(16, _round_up(pl.cdiv(n, 2), 16))
        return 512
    if n <= 1024:
        return max(16, _round_up(n, 16))
    return 512


def prepare_params(params, compute_dtype=jnp.bfloat16):
    """One-time cast / pad / pack of the Predictor parameters.
    Matmul weights are cast to `compute_dtype`; biases and LayerNorm params
    stay f32 (f32 accumulation + f32 LN statistics inside the kernel).
    The final Linear is zero-padded to a lane-dense (>=128) output width."""
    num_hidden = len(params["w"]) - 1
    g_out = params["w_graph"].shape[1]
    hidden = params["w"][0].shape[1] if num_hidden > 0 else g_out
    out_dim = params["w"][-1].shape[1]
    out_pad = _round_up(max(out_dim, 128), 128)

    w_last = params["w"][-1]
    w_last_p = jnp.zeros((w_last.shape[0], out_pad),
                         w_last.dtype).at[:, :out_dim].set(w_last)

    pack_w = max(g_out, hidden, out_pad)
    rows = [jnp.pad(params["b_graph"], (0, pack_w - g_out))]
    for i in range(num_hidden):
        rows.append(jnp.pad(params["b"][i],     (0, pack_w - hidden)))
        rows.append(jnp.pad(params["gamma"][i], (0, pack_w - hidden)))
        rows.append(jnp.pad(params["beta"][i],  (0, pack_w - hidden)))
    rows.append(jnp.pad(params["b"][-1], (0, pack_w - out_dim)))
    pack = jnp.stack(rows).astype(jnp.float32)    # (2 + 3*num_hidden, pack_w)

    return {
        "compute_dtype": compute_dtype,
        "num_hidden": num_hidden,
        "g_out": g_out,
        "hidden": hidden,
        "out_dim": out_dim,
        "out_pad": out_pad,
        "w_graph": params["w_graph"].astype(compute_dtype),
        "w_hidden": [params["w"][i].astype(compute_dtype)
                     for i in range(num_hidden)],
        "w_last": w_last_p.astype(compute_dtype),
        "pack": pack,
    }


def predictor_head(agg, deg, prep):
    """One fused pallas_call tiled over rows; all weights resident in VMEM."""
    n, f_in = agg.shape
    num_hidden = prep["num_hidden"]
    out_pad, out_dim = prep["out_pad"], prep["out_dim"]

    num_cores = _num_tensorcores_per_chip()
    tm = _choose_row_tile(n, num_cores)
    n_pad = _round_up(n, tm)
    if n_pad != n:
        agg = jnp.pad(agg, ((0, n_pad - n), (0, 0)))
        deg = jnp.pad(deg, ((0, n_pad - n), (0, 0)), constant_values=1.0)

    def row_spec(d):
        return pl.BlockSpec((tm, d), lambda i: (i, 0))

    def const_spec(shape):
        # Constant block index -> fetched once, stays resident in VMEM.
        return pl.BlockSpec(shape, lambda i: (0, 0))

    inputs = [agg, deg, prep["pack"], prep["w_graph"],
              *prep["w_hidden"], prep["w_last"]]
    in_specs = [row_spec(f_in), row_spec(1),
                const_spec(prep["pack"].shape),
                const_spec(prep["w_graph"].shape)]
    in_specs += [const_spec(w.shape) for w in prep["w_hidden"]]
    in_specs += [const_spec(prep["w_last"].shape)]

    # VMEM budget (lane-padded, double-buffered blocks). Only raise the scoped
    # limit when actually needed (matters on v7x: 64 MiB physical VMEM).
    est = 2 * tm * _round_up(out_pad, 128) * 4
    for a, s in zip(inputs, in_specs):
        blk = s.block_shape
        est += 2 * blk[0] * _round_up(blk[1], 128) * a.dtype.itemsize
    compiler_kwargs = dict(dimension_semantics=("parallel",))
    if est > 30 * 2**20:
        compiler_kwargs["vmem_limit_bytes"] = min(int(est * 1.25), 60 * 2**20)

    approx = prep["compute_dtype"] == jnp.bfloat16
    out = pl.pallas_call(
        _make_fused_kernel(num_hidden, prep["g_out"], prep["hidden"],
                           out_pad, approx),
        out_shape=jax.ShapeDtypeStruct((n_pad, out_pad), jnp.float32),
        grid=(n_pad // tm,),
        in_specs=in_specs,
        out_specs=pl.BlockSpec((tm, out_pad), lambda i: (i, 0)),
        compiler_params=pltpu.CompilerParams(**compiler_kwargs),
    )(*inputs)
    return out[:n, :out_dim]


# ------------------------------- model glue ----------------------------------

def graph_aggregate(x, edge_index):
    """Data-dependent gather/scatter part of the GCN-style graph layer
    (plain-JAX glue); normalization / ReLU / projection are fused in-kernel.
    # TODO(synk): the real graph_model architecture is an external dependency
    # (not defined in predictor.py); a single GCN-style layer is used here.
    """
    n = x.shape[0]
    src, dst = edge_index[0], edge_index[1]
    self_idx = jnp.arange(n, dtype=edge_index.dtype)     # add self loops
    src = jnp.concatenate([src, self_idx])
    dst = jnp.concatenate([dst, self_idx])
    agg = jax.ops.segment_sum(x[src], dst, num_segments=n)
    deg = jax.ops.segment_sum(jnp.ones((src.shape[0], 1), x.dtype), dst,
                              num_segments=n)
    return agg, deg


def predictor_forward(prep, x, edge_index):
    """Mirror of Predictor.forward (eval mode)."""
    agg, deg = graph_aggregate(x, edge_index)
    if prep["compute_dtype"] == jnp.bfloat16:
        agg = agg.astype(jnp.bfloat16)     # halve the only per-step HBM stream
    return predictor_head(agg, deg, prep)


# ----------------------------- setup / main -----------------------------------

def init_params(key, in_features, graph_out_dim, hidden, out_channels, layers):
    keys = jax.random.split(key, 2 + 2 * layers)
    params = {
        "w_graph": jax.random.normal(keys[0], (in_features, graph_out_dim),
                                     jnp.float32) * 0.1,
        "b_graph": jax.random.normal(keys[1], (graph_out_dim,),
                                     jnp.float32) * 0.01,
        "w": [], "b": [], "gamma": [], "beta": [],
    }
    for i in range(layers):
        d_in = graph_out_dim if i == 0 else hidden
        d_out = hidden if i != layers - 1 else out_channels
        params["w"].append(
            jax.random.normal(keys[2 + 2 * i], (d_in, d_out), jnp.float32) * 0.1)
        params["b"].append(
            jax.random.normal(keys[3 + 2 * i], (d_out,), jnp.float32) * 0.01)
        if i != layers - 1:
            params["gamma"].append(jnp.ones((d_out,), jnp.float32))
            params["beta"].append(jnp.zeros((d_out,), jnp.float32))
    return params


def ref_forward(params, x, edge_index, layers):
    """Pure-JAX f32 reference (highest-precision matmuls)."""
    n = x.shape[0]
    src, dst = edge_index[0], edge_index[1]
    self_idx = jnp.arange(n, dtype=edge_index.dtype)
    src = jnp.concatenate([src, self_idx])
    dst = jnp.concatenate([dst, self_idx])
    agg = jax.ops.segment_sum(x[src], dst, num_segments=n)
    deg = jax.ops.segment_sum(jnp.ones((src.shape[0], 1), x.dtype), dst,
                              num_segments=n)
    h = agg / jnp.maximum(deg, 1.0)
    h = jnp.maximum(
        jnp.dot(h, params["w_graph"], precision="highest") + params["b_graph"], 0.0)
    for i in range(layers - 1):
        y = jnp.dot(h, params["w"][i], precision="highest") + params["b"][i]
        mu = y.mean(-1, keepdims=True)
        var = ((y - mu) ** 2).mean(-1, keepdims=True)
        h = (y - mu) / jnp.sqrt(var + 1e-5) * params["gamma"][i] + params["beta"][i]
    return jnp.dot(h, params["w"][-1], precision="highest") + params["b"][-1]


if __name__ == "__main__":
    # Small deterministic problem: 200 nodes (exercises row padding),
    # 64 input feats, graph_output_dim=128, hidden_channels=128,
    # output_channels=4, layers=3 (eval-mode dropout).
    N, F_IN, G_OUT, HIDDEN, OUT, LAYERS = 200, 64, 128, 128, 4, 3

    key = jax.random.PRNGKey(0)
    k_x, k_p = jax.random.split(key)

    x = jax.random.normal(k_x, (N, F_IN), jnp.float32)
    # deterministic ring graph (bidirectional edges)
    idx = jnp.arange(N, dtype=jnp.int32)
    nxt = (idx + 1) % N
    edge_index = jnp.stack(
        [jnp.concatenate([idx, nxt]), jnp.concatenate([nxt, idx])], axis=0)

    params = init_params(k_p, F_IN, G_OUT, HIDDEN, OUT, LAYERS)
    ref = ref_forward(params, x, edge_index, LAYERS)

    # f32 matmul path (tight check)
    prep_f32 = prepare_params(params, compute_dtype=jnp.float32)
    out = predictor_forward(prep_f32, x, edge_index)
    jax.block_until_ready(out)
    assert out.shape == (N, OUT), out.shape
    assert jnp.allclose(out, ref, atol=1e-3, rtol=1e-3), \
        float(jnp.max(jnp.abs(out - ref)))

    # bf16 matmul-input path (default; f32 accum + f32 LayerNorm) -> loose check
    prep_bf16 = prepare_params(params)          # compute_dtype defaults to bf16
    out_bf16 = predictor_forward(prep_bf16, x, edge_index)
    jax.block_until_ready(out_bf16)
    assert out_bf16.shape == (N, OUT)
    assert jnp.allclose(out_bf16, ref, atol=0.2, rtol=0.2)

    print("KERNEL_OK")
</pallas_src>

<mosaic_0001>
module attributes {stable_mosaic.version = 11 : i64} {
  func.func @kernel(%arg0: i32, %arg1: memref<208x64xf32, #tpu.memory_space<vmem>>, %arg2: memref<208x1xf32, #tpu.memory_space<vmem>>, %arg3: memref<8x128xf32, #tpu.memory_space<vmem>>, %arg4: memref<64x128xf32, #tpu.memory_space<vmem>>, %arg5: memref<128x128xf32, #tpu.memory_space<vmem>>, %arg6: memref<128x128xf32, #tpu.memory_space<vmem>>, %arg7: memref<128x128xf32, #tpu.memory_space<vmem>>, %arg8: memref<208x128xf32, #tpu.memory_space<vmem>>) attributes {dimension_semantics = [#tpu.dimension_semantics<parallel>], iteration_bounds = array<i64: 1>, scalar_prefetch = 0 : i64, scratch_operands = 0 : i64, tpu.core_type = #tpu.core_type<tc>, window_params = [{transform_indices = @transform_0, window_bounds = array<i64: 208, 64>}, {transform_indices = @transform_1, window_bounds = array<i64: 208, 1>}, {pipeline_mode = #tpu.pipeline_mode<synchronous>, transform_indices = @transform_2, window_bounds = array<i64: 8, 128>}, {pipeline_mode = #tpu.pipeline_mode<synchronous>, transform_indices = @transform_3, window_bounds = array<i64: 64, 128>}, {pipeline_mode = #tpu.pipeline_mode<synchronous>, transform_indices = @transform_4, window_bounds = array<i64: 128, 128>}, {pipeline_mode = #tpu.pipeline_mode<synchronous>, transform_indices = @transform_5, window_bounds = array<i64: 128, 128>}, {pipeline_mode = #tpu.pipeline_mode<synchronous>, transform_indices = @transform_6, window_bounds = array<i64: 128, 128>}, {transform_indices = @transform_7, window_bounds = array<i64: 208, 128>}]} {
    %c0 = arith.constant 0 : index
    %c0_0 = arith.constant 0 : index
    %0 = vector.load %arg2[%c0, %c0_0] : memref<208x1xf32, #tpu.memory_space<vmem>>, vector<208x1xf32>
    %cst = arith.constant 1.000000e+00 : f32
    %1 = vector.broadcast %cst : f32 to vector<208x1xf32>
    %2 = arith.maximumf %0, %1 : vector<208x1xf32>
    %3 = tpu.reciprocal %2 : vector<208x1xf32> -> vector<208x1xf32>
    %c0_1 = arith.constant 0 : index
    %c0_2 = arith.constant 0 : index
    %4 = vector.load %arg1[%c0_1, %c0_2] : memref<208x64xf32, #tpu.memory_space<vmem>>, vector<208x64xf32>
    %5 = vector.broadcast %3 : vector<208x1xf32> to vector<208x64xf32>
    %6 = arith.mulf %4, %5 : vector<208x64xf32>
    %c0_3 = arith.constant 0 : index
    %c0_4 = arith.constant 0 : index
    %7 = vector.load %arg4[%c0_3, %c0_4] : memref<64x128xf32, #tpu.memory_space<vmem>>, vector<64x128xf32>
    %cst_5 = arith.constant dense<0.000000e+00> : vector<208x128xf32>
    %8 = tpu.matmul %6, %7, %cst_5 {dimension_numbers = #tpu.dot_dimension_numbers<[1], [0], [0], [1], [0, 0, 1, 1], [], []>} : vector<208x64xf32>, vector<64x128xf32>, vector<208x128xf32> -> vector<208x128xf32>
    %c0_6 = arith.constant 0 : index
    %c0_7 = arith.constant 0 : index
    %9 = vector.load %arg3[%c0_6, %c0_7] : memref<8x128xf32, #tpu.memory_space<vmem>>, vector<1x128xf32>
    %10 = vector.broadcast %9 : vector<1x128xf32> to vector<208x128xf32>
    %11 = arith.addf %8, %10 : vector<208x128xf32>
    %cst_8 = arith.constant 0.000000e+00 : f32
    %12 = vector.broadcast %cst_8 : f32 to vector<208x128xf32>
    %13 = arith.maximumf %11, %12 : vector<208x128xf32>
    %c1 = arith.constant 1 : index
    %c0_9 = arith.constant 0 : index
    %14 = vector.load %arg3[%c1, %c0_9] : memref<8x128xf32, #tpu.memory_space<vmem>>, vector<1x128xf32>
    %c2 = arith.constant 2 : index
    %c0_10 = arith.constant 0 : index
    %15 = vector.load %arg3[%c2, %c0_10] : memref<8x128xf32, #tpu.memory_space<vmem>>, vector<1x128xf32>
    %c3 = arith.constant 3 : index
    %c0_11 = arith.constant 0 : index
    %16 = vector.load %arg3[%c3, %c0_11] : memref<8x128xf32, #tpu.memory_space<vmem>>, vector<1x128xf32>
    %c0_12 = arith.constant 0 : index
    %c0_13 = arith.constant 0 : index
    %17 = vector.load %arg5[%c0_12, %c0_13] : memref<128x128xf32, #tpu.memory_space<vmem>>, vector<128x128xf32>
    %cst_14 = arith.constant dense<0.000000e+00> : vector<208x128xf32>
    %18 = tpu.matmul %13, %17, %cst_14 {dimension_numbers = #tpu.dot_dimension_numbers<[1], [0], [0], [1], [0, 0, 1, 1], [], []>} : vector<208x128xf32>, vector<128x128xf32>, vector<208x128xf32> -> vector<208x128xf32>
    %19 = vector.broadcast %14 : vector<1x128xf32> to vector<208x128xf32>
    %20 = arith.addf %18, %19 : vector<208x128xf32>
    %cst_15 = arith.constant dense<0.000000e+00> : vector<208xf32>
    %21 = vector.multi_reduction <add>, %20, %cst_15 [1] : vector<208x128xf32> to vector<208xf32>
    %22 = vector.shape_cast %21 : vector<208xf32> to vector<208x1xf32>
    %cst_16 = arith.constant 1.280000e+02 : f32
    %23 = vector.broadcast %cst_16 : f32 to vector<208x1xf32>
    %24 = arith.divf %22, %23 : vector<208x1xf32>
    %25 = vector.broadcast %24 : vector<208x1xf32> to vector<208x128xf32>
    %26 = arith.subf %20, %25 : vector<208x128xf32>
    %27 = arith.mulf %26, %26 : vector<208x128xf32>
    %cst_17 = arith.constant dense<0.000000e+00> : vector<208xf32>
    %28 = vector.multi_reduction <add>, %27, %cst_17 [1] : vector<208x128xf32> to vector<208xf32>
    %29 = vector.shape_cast %28 : vector<208xf32> to vector<208x1xf32>
    %cst_18 = arith.constant 1.280000e+02 : f32
    %30 = vector.broadcast %cst_18 : f32 to vector<208x1xf32>
    %31 = arith.divf %29, %30 : vector<208x1xf32>
    %cst_19 = arith.constant 9.99999974E-6 : f32
    %32 = vector.broadcast %cst_19 : f32 to vector<208x1xf32>
    %33 = arith.addf %31, %32 : vector<208x1xf32>
    %34 = math.rsqrt %33 : vector<208x1xf32>
    %35 = vector.broadcast %34 : vector<208x1xf32> to vector<208x128xf32>
    %36 = vector.broadcast %15 : vector<1x128xf32> to vector<208x128xf32>
    %37 = arith.mulf %35, %36 : vector<208x128xf32>
    %38 = arith.mulf %26, %37 : vector<208x128xf32>
    %39 = vector.broadcast %16 : vector<1x128xf32> to vector<208x128xf32>
    %40 = arith.addf %38, %39 : vector<208x128xf32>
    %c4 = arith.constant 4 : index
    %c0_20 = arith.constant 0 : index
    %41 = vector.load %arg3[%c4, %c0_20] : memref<8x128xf32, #tpu.memory_space<vmem>>, vector<1x128xf32>
    %c5 = arith.constant 5 : index
    %c0_21 = arith.constant 0 : index
    %42 = vector.load %arg3[%c5, %c0_21] : memref<8x128xf32, #tpu.memory_space<vmem>>, vector<1x128xf32>
    %c6 = arith.constant 6 : index
    %c0_22 = arith.constant 0 : index
    %43 = vector.load %arg3[%c6, %c0_22] : memref<8x128xf32, #tpu.memory_space<vmem>>, vector<1x128xf32>
    %c0_23 = arith.constant 0 : index
    %c0_24 = arith.constant 0 : index
    %44 = vector.load %arg6[%c0_23, %c0_24] : memref<128x128xf32, #tpu.memory_space<vmem>>, vector<128x128xf32>
    %cst_25 = arith.constant dense<0.000000e+00> : vector<208x128xf32>
    %45 = tpu.matmul %40, %44, %cst_25 {dimension_numbers = #tpu.dot_dimension_numbers<[1], [0], [0], [1], [0, 0, 1, 1], [], []>} : vector<208x128xf32>, vector<128x128xf32>, vector<208x128xf32> -> vector<208x128xf32>
    %46 = vector.broadcast %41 : vector<1x128xf32> to vector<208x128xf32>
    %47 = arith.addf %45, %46 : vector<208x128xf32>
    %cst_26 = arith.constant dense<0.000000e+00> : vector<208xf32>
    %48 = vector.multi_reduction <add>, %47, %cst_26 [1] : vector<208x128xf32> to vector<208xf32>
    %49 = vector.shape_cast %48 : vector<208xf32> to vector<208x1xf32>
    %cst_27 = arith.constant 1.280000e+02 : f32
    %50 = vector.broadcast %cst_27 : f32 to vector<208x1xf32>
    %51 = arith.divf %49, %50 : vector<208x1xf32>
    %52 = vector.broadcast %51 : vector<208x1xf32> to vector<208x128xf32>
    %53 = arith.subf %47, %52 : vector<208x128xf32>
    %54 = arith.mulf %53, %53 : vector<208x128xf32>
    %cst_28 = arith.constant dense<0.000000e+00> : vector<208xf32>
    %55 = vector.multi_reduction <add>, %54, %cst_28 [1] : vector<208x128xf32> to vector<208xf32>
    %56 = vector.shape_cast %55 : vector<208xf32> to vector<208x1xf32>
    %cst_29 = arith.constant 1.280000e+02 : f32
    %57 = vector.broadcast %cst_29 : f32 to vector<208x1xf32>
    %58 = arith.divf %56, %57 : vector<208x1xf32>
    %cst_30 = arith.constant 9.99999974E-6 : f32
    %59 = vector.broadcast %cst_30 : f32 to vector<208x1xf32>
    %60 = arith.addf %58, %59 : vector<208x1xf32>
    %61 = math.rsqrt %60 : vector<208x1xf32>
    %62 = vector.broadcast %61 : vector<208x1xf32> to vector<208x128xf32>
    %63 = vector.broadcast %42 : vector<1x128xf32> to vector<208x128xf32>
    %64 = arith.mulf %62, %63 : vector<208x128xf32>
    %65 = arith.mulf %53, %64 : vector<208x128xf32>
    %66 = vector.broadcast %43 : vector<1x128xf32> to vector<208x128xf32>
    %67 = arith.addf %65, %66 : vector<208x128xf32>
    %c7 = arith.constant 7 : index
    %c0_31 = arith.constant 0 : index
    %68 = vector.load %arg3[%c7, %c0_31] : memref<8x128xf32, #tpu.memory_space<vmem>>, vector<1x128xf32>
    %c0_32 = arith.constant 0 : index
    %c0_33 = arith.constant 0 : index
    %69 = vector.load %arg7[%c0_32, %c0_33] : memref<128x128xf32, #tpu.memory_space<vmem>>, vector<128x128xf32>
    %cst_34 = arith.constant dense<0.000000e+00> : vector<208x128xf32>
    %70 = tpu.matmul %67, %69, %cst_34 {dimension_numbers = #tpu.dot_dimension_numbers<[1], [0], [0], [1], [0, 0, 1, 1], [], []>} : vector<208x128xf32>, vector<128x128xf32>, vector<208x128xf32> -> vector<208x128xf32>
    %71 = vector.broadcast %68 : vector<1x128xf32> to vector<208x128xf32>
    %72 = arith.addf %70, %71 : vector<208x128xf32>
    %c0_35 = arith.constant 0 : index
    %c0_36 = arith.constant 0 : index
    %73 = vector.load %arg8[%c0_35, %c0_36] : memref<208x128xf32, #tpu.memory_space<vmem>>, vector<208x128xf32>
    tpu.vector_store %arg8[%c0_35, %c0_36], %72 {strides = array<i32>} : memref<208x128xf32, #tpu.memory_space<vmem>>, vector<208x128xf32>,
    return
  }
  func.func @transform_0(%arg0: i32) -> (i32, i32) {
    %c0_i32 = arith.constant 0 : i32
    %c0_i32_0 = arith.constant 0 : i32
    return %arg0, %c0_i32 : i32, i32
  }
  func.func @transform_1(%arg0: i32) -> (i32, i32) {
    %c0_i32 = arith.constant 0 : i32
    %c0_i32_0 = arith.constant 0 : i32
    return %arg0, %c0_i32 : i32, i32
  }
  func.func @transform_2(%arg0: i32) -> (i32, i32) {
    %c0_i32 = arith.constant 0 : i32
    %c0_i32_0 = arith.constant 0 : i32
    %c0_i32_1 = arith.constant 0 : i32
    return %c0_i32, %c0_i32_0 : i32, i32
  }
  func.func @transform_3(%arg0: i32) -> (i32, i32) {
    %c0_i32 = arith.constant 0 : i32
    %c0_i32_0 = arith.constant 0 : i32
    %c0_i32_1 = arith.constant 0 : i32
    return %c0_i32, %c0_i32_0 : i32, i32
  }
  func.func @transform_4(%arg0: i32) -> (i32, i32) {
    %c0_i32 = arith.constant 0 : i32
    %c0_i32_0 = arith.constant 0 : i32
    %c0_i32_1 = arith.constant 0 : i32
    return %c0_i32, %c0_i32_0 : i32, i32
  }
  func.func @transform_5(%arg0: i32) -> (i32, i32) {
    %c0_i32 = arith.constant 0 : i32
    %c0_i32_0 = arith.constant 0 : i32
    %c0_i32_1 = arith.constant 0 : i32
    return %c0_i32, %c0_i32_0 : i32, i32
  }
  func.func @transform_6(%arg0: i32) -> (i32, i32) {
    %c0_i32 = arith.constant 0 : i32
    %c0_i32_0 = arith.constant 0 : i32
    %c0_i32_1 = arith.constant 0 : i32
    return %c0_i32, %c0_i32_0 : i32, i32
  }
  func.func @transform_7(%arg0: i32) -> (i32, i32) {
    %c0_i32 = arith.constant 0 : i32
    %c0_i32_0 = arith.constant 0 : i32
    return %arg0, %c0_i32 : i32, i32
  }
}

</mosaic_0001>

<bundles_post_ra>
// kernel: tpu_custom_call.1
= control target key start
LH: loop header
LB: loop body
LE: loop exit
PB: predicated region body
PF: predicated region fallthrough
CT: control target
= control target key end

     0   :  { %v2665_v3 = vmov 0   ;;  %s3787_s0 = inlined_call_operand.vmem [shape: f32[208,64], index: 0, kind: input, shape index: {}]   ;;  %s3788_s1 = inlined_call_operand.vmem [shape: f32[208,1], index: 1, kind: input, shape index: {}]   ;;  %s3789_s2 = inlined_call_operand.vmem [shape: f32[8,128], index: 2, kind: input, shape index: {}]   ;;  %s3790_s3 = inlined_call_operand.vmem [shape: f32[64,128], index: 3, kind: input, shape index: {}]   ;;  %s3791_s4 = inlined_call_operand.vmem [shape: f32[128,128], index: 4, kind: input, shape index: {}]   ;;  %s3792_s5 = inlined_call_operand.vmem [shape: f32[128,128], index: 5, kind: input, shape index: {}]   ;;  %s3793_s6 = inlined_call_operand.vmem [shape: f32[128,128], index: 6, kind: input, shape index: {}]   ;;  %s3794_s7 = inlined_call_operand.hbm [shape: f32[208,128], index: 7, kind: output, shape index: {}]  }
   0x1   :  { %v29_v0 = vld [vmem:[%s3788_s1 + $0x10] sm:$0xff]  ;;  %v27_v1 = vld [vmem:[%s3788_s1] sm:$0xff]  ;;  %v30_v2 = vld [vmem:[%s3788_s1 + $0x18] sm:$0xff]  ;;  %2486 = vset.pattern.permute.xlu1 %v2665_v3  ;;  %2485 = vset.pattern.permute.xlu0 %v2665_v3 }
   0x2   :  { %v55_v4 = vmax.f32 %v29_v0, 1.0  ;;  %v53_v5 = vmax.f32 %v27_v1, 1.0  ;;  %v56_v6 = vmax.f32 %v30_v2, 1.0  ;;  %v28_v7 = vld [vmem:[%s3788_s1 + $0x8] sm:$0xff]  ;;  %v31_v10 = vld [vmem:[%s3788_s1 + $0x20] sm:$0xff]  ;;  %v34_v13 = vld [vmem:[%s3788_s1 + $0x38] sm:$0xff] }
   0x3   :  { %v54_v8 = vmax.f32 %v28_v7, 1.0  ;;  %v32_v9 = vld [vmem:[%s3788_s1 + $0x28] sm:$0xff]  ;;  %v57_v12 = vmax.f32 %v31_v10, 1.0  ;;  %v33_v14 = vld [vmem:[%s3788_s1 + $0x30] sm:$0xff]  ;;  %v294_v15 = vld [vmem:[%s3790_s3 + $0x38] sm:$0xff]  ;;  %v60_v16 = vmax.f32 %v34_v13, 1.0 }
   0x4   :  { %2487 = vrcp.f32 %v55_v4  ;;  %v58_v11 = vmax.f32 %v32_v9, 1.0  ;;  %2181 = vmatprep.subr.mxu0 %v294_v15  ;;  %v293_v17 = vld [vmem:[%s3790_s3 + $0x30] sm:$0xff]  ;;  %v59_v18 = vmax.f32 %v33_v14, 1.0  ;;  %v36_v19 = vld [vmem:[%s3788_s1 + $0x48] sm:$0xff] }
   0x5   :  { %2489 = vrcp.f32 %v53_v5  ;;  %2182 = vmatpush3.msra.mxu0 %v294_v15  ;;  %v292_v20 = vld [vmem:[%s3790_s3 + $0x28] sm:$0xff] }
   0x6   :  { %2491 = vrcp.f32 %v56_v6 }
   0x7   :  { %2493 = vrcp.f32 %v54_v8 }
   0x8   :  { %2495 = vrcp.f32 %v58_v11 }
   0x9   :  { %2497 = vrcp.f32 %v57_v12 }
   0xa   :  { %12 = vsyncpa [#allocation3], 0  ;;  %v35_v21 = vld [vmem:[%s3788_s1 + $0x40] sm:$0xff]  ;;  %2183 = vmatprep.subr.mxu0 %v293_v17  ;;  %2499 = vrcp.f32 %v60_v16  ;;  %v62_v23 = vmax.f32 %v36_v19, 1.0  ;;  %v38_v25 = vld [vmem:[%s3788_s1 + $0x58] sm:$0xff]  ;;  %vm300_vm0 = vcmask 523264  }
   0xb   :  { %2184 = vmatpush3.msra.mxu0 %v293_v17  ;;  %v291_v22 = vld [vmem:[%s3790_s3 + $0x20] sm:$0xff]  ;;  %2501 = vrcp.f32 %v59_v18  ;;  %v61_v24 = vmax.f32 %v35_v21, 1.0  ;;  %v290_v26 = vld [vmem:[%s3790_s3 + $0x18] sm:$0xff]  ;;  %v37_v27 = vld [vmem:[%s3788_s1 + $0x50] sm:$0xff]  ;;  %v64_v31 = vmax.f32 %v38_v25, 1.0 }
   0xc   :  { %2185 = vmatprep.subr.mxu0 %v292_v20  ;;  %v289_v29 = vld [vmem:[%s3790_s3 + $0x10] sm:$0xff]  ;;  %2503 = vrcp.f32 %v62_v23  ;;  %v63_v33 = vmax.f32 %v37_v27, 1.0  ;;  %v40_v34 = vld [vmem:[%s3788_s1 + $0x68] sm:$0xff]  ;;  %v39_v37 = vld [vmem:[%s3788_s1 + $0x60] sm:$0xff] }
   0xd   :  { %2186 = vmatpush3.msra.mxu0 %v292_v20  ;;  %2505 = vrcp.f32 %v61_v24  ;;  %v288_v35 = vld [vmem:[%s3790_s3 + $0x8] sm:$0xff]  ;;  %v287_v38 = vld [vmem:[%s3790_s3] sm:$0xff]  ;;  %v66_v39 = vmax.f32 %v40_v34, 1.0  ;;  %v65_v41 = vmax.f32 %v39_v37, 1.0  ;;  %v42_v42 = vld [vmem:[%s3788_s1 + $0x78] sm:$0xff] }
   0xe   :  { %2187 = vmatprep.subr.mxu0 %v291_v22  ;;  %2507 = vrcp.f32 %v64_v31  ;;  %v41_v44 = vld [vmem:[%s3788_s1 + $0x70] sm:$0xff]  ;;  %v68_v45 = vmax.f32 %v42_v42, 1.0  ;;  %v44_v48 = vld [vmem:[%s3788_s1 + $0x88] sm:$0xff]  ;;  %v43_v50 = vld [vmem:[%s3788_s1 + $0x80] sm:$0xff] }
   0xf   :  { %2188 = vmatpush3.msra.mxu0 %v291_v22  ;;  %2509 = vrcp.f32 %v63_v33  ;;  %v67_v47 = vmax.f32 %v41_v44, 1.0  ;;  %v70_v51 = vmax.f32 %v44_v48, 1.0  ;;  %v69_v53 = vmax.f32 %v43_v50, 1.0  ;;  %v46_v54 = vld [vmem:[%s3788_s1 + $0x98] sm:$0xff]  ;;  %v45_v56 = vld [vmem:[%s3788_s1 + $0x90] sm:$0xff]  ;;  %v48_v60 = vld [vmem:[%s3788_s1 + $0xa8] sm:$0xff] }
  0x10   :  { %2189 = vmatprep.subr.mxu0 %v290_v26  ;;  %2511 = vrcp.f32 %v66_v39  ;;  %v72_v57 = vmax.f32 %v46_v54, 1.0  ;;  %v71_v59 = vmax.f32 %v45_v56, 1.0  ;;  %v47_v62 = vld [vmem:[%s3788_s1 + $0xa0] sm:$0xff]  ;;  %v74_v63 = vmax.f32 %v48_v60, 1.0  ;;  %v50_v2 = vld [vmem:[%s3788_s1 + $0xb8] sm:$0xff]  ;;  %v49_v4 = vld [vmem:[%s3788_s1 + $0xb0] sm:$0xff] }
  0x11   :  { %v2488_v28 = vpop.eup %2487  ;;  %2190 = vmatpush3.msra.mxu0 %v290_v26  ;;  %2513 = vrcp.f32 %v65_v41  ;;  %v73_v1 = vmax.f32 %v47_v62, 1.0  ;;  %v76_v5 = vmax.f32 %v50_v2, 1.0  ;;  %v75_v7 = vmax.f32 %v49_v4, 1.0  ;;  %v52_v8 = vld [vmem:[%s3788_s1 + $0xc8] sm:$0xff]  ;;  %v51_v10 = vld [vmem:[%s3788_s1 + $0xc0] sm:$0xff]  ;;  %v618_v23 = vld [vmem:[%s3791_s4 + $0x78] sm:$0xff] }
  0x12   :  { %v2490_v30 = vpop.eup %2489  ;;  %143 = vperm.xlu1 %2486, %v2488_v28   ;;  %2191 = vmatprep.subr.mxu0 %v289_v29  ;;  %2515 = vrcp.f32 %v68_v45  ;;  %v78_v11 = vmax.f32 %v52_v8, 1.0  ;;  %v77_v13 = vmax.f32 %v51_v10, 1.0  ;;  %v617_v24 = vld [vmem:[%s3791_s4 + $0x70] sm:$0xff]  ;;  %v616_v25 = vld [vmem:[%s3791_s4 + $0x68] sm:$0xff]  ;;  %v615_v26 = vld [vmem:[%s3791_s4 + $0x60] sm:$0xff] }
  0x13   :  { %v2492_v32 = vpop.eup %2491  ;;  %133 = vperm.xlu0 %2485, %v2490_v30   ;;  %2192 = vmatpush3.msra.mxu0 %v289_v29  ;;  %2517 = vrcp.f32 %v67_v47  ;;  %v614_v27 = vld [vmem:[%s3791_s4 + $0x58] sm:$0xff]  ;;  %v613_v28 = vld [vmem:[%s3791_s4 + $0x50] sm:$0xff]  ;;  %v612_v29 = vld [vmem:[%s3791_s4 + $0x48] sm:$0xff] }
  0x14   :  { %v2494_v36 = vpop.eup %2493  ;;  %2193 = vmatprep.subr.mxu0 %v288_v35  ;;  %2519 = vrcp.f32 %v70_v51  ;;  %2236 = vmatprep.subr.mxu1 %v618_v23  ;;  %v611_v30 = vld [vmem:[%s3791_s4 + $0x40] sm:$0xff]  ;;  %v610_v31 = vld [vmem:[%s3791_s4 + $0x38] sm:$0xff]  ;;  %v608_v33 = vld [vmem:[%s3791_s4 + $0x28] sm:$0xff] }
  0x15   :  { %v2496_v40 = vpop.eup %2495  ;;  %2194 = vmatpush3.msra.mxu0 %v288_v35  ;;  %2521 = vrcp.f32 %v69_v53  ;;  %2237 = vmatpush3.msra.mxu1 %v618_v23  ;;  %v607_v34 = vld [vmem:[%s3791_s4 + $0x20] sm:$0xff]  ;;  %v108_v45 = vld [vmem:[%s3787_s0 + $0x18] sm:$0xff]  ;;  %v110_v51 = vld [vmem:[%s3787_s0 + $0x28] sm:$0xff] }
  0x16   :  { %148 = vperm.xlu1 %2486, %v2492_v32   ;;  %v2498_v43 = vpop.eup %2497  ;;  %2195 = vmatprep.subr.mxu0 %v287_v38  ;;  %2523 = vrcp.f32 %v72_v57  ;;  %v609_v32 = vld [vmem:[%s3791_s4 + $0x30] sm:$0xff]  ;;  %v105_v35 = vld [vmem:[%s3787_s0] sm:$0xff]  ;;  %v112_v57 = vld [vmem:[%s3787_s0 + $0x38] sm:$0xff] }
  0x17   :  { %138 = vperm.xlu0 %2485, %v2494_v36   ;;  %2196 = vmatpush3.msra.mxu0 %v287_v38  ;;  %v2500_v46 = vpop.eup %2499  ;;  %2525 = vrcp.f32 %v71_v59  ;;  %v107_v38 = vld [vmem:[%s3787_s0 + $0x10] sm:$0xff]  ;;  %v122_v23 = vld [vmem:[%s3787_s0 + $0x88] sm:$0xff] }
  0x18   :  { %v2502_v49 = vpop.eup %2501  ;;  %2527 = vrcp.f32 %v74_v63  ;;  %2238 = vmatprep.subr.mxu1 %v617_v24  ;;  %v114_v63 = vld [vmem:[%s3787_s0 + $0x48] sm:$0xff] }
  0x19   :  { %v2504_v52 = vpop.eup %2503  ;;  %2529 = vrcp.f32 %v73_v1  ;;  %2239 = vmatpush3.msra.mxu1 %v617_v24  ;;  %v123_v24 = vld [vmem:[%s3787_s0 + $0x90] sm:$0xff] }
  0x1a   :  { %158 = vperm.xlu1 %2486, %v2496_v40   ;;  %v2506_v55 = vpop.eup %2505  ;;  %2531 = vrcp.f32 %v76_v5  ;;  %2240 = vmatprep.subr.mxu1 %v616_v25  ;;  %v106_v40 = vld [vmem:[%s3787_s0 + $0x8] sm:$0xff]  ;;  %v116_v5 = vld [vmem:[%s3787_s0 + $0x58] sm:$0xff] }
  0x1b   :  { %153 = vperm.xlu0 %2485, %v2498_v43   ;;  %v2508_v58 = vpop.eup %2507  ;;  %2533 = vrcp.f32 %v75_v7  ;;  %2241 = vmatpush3.msra.mxu1 %v616_v25 }
  0x1c   :  { %v2510_v61 = vpop.eup %2509  ;;  %2535 = vrcp.f32 %v78_v11  ;;  %2242 = vmatprep.subr.mxu1 %v615_v26  ;;  %v118_v11 = vld [vmem:[%s3787_s0 + $0x68] sm:$0xff] }
  0x1d   :  { %v2512_v0 = vpop.eup %2511  ;;  %2537 = vrcp.f32 %v77_v13  ;;  %2243 = vmatpush3.msra.mxu1 %v615_v26 }
  0x1e   :  { %168 = vperm.xlu1 %2486, %v2500_v46   ;;  %v2514_v3 = vpop.eup %2513  ;;  %2244 = vmatprep.subr.mxu1 %v614_v27  ;;  %v109_v46 = vld [vmem:[%s3787_s0 + $0x20] sm:$0xff] }
  0x1f   :  { %163 = vperm.xlu0 %2485, %v2502_v49   ;;  %v2516_v6 = vpop.eup %2515  ;;  %2245 = vmatpush3.msra.mxu1 %v614_v27 }
  0x20   :  { %v2518_v9 = vpop.eup %2517  ;;  %2246 = vmatprep.subr.mxu1 %v613_v28 }
  0x21   :  { %v2520_v12 = vpop.eup %2519  ;;  %2247 = vmatpush3.msra.mxu1 %v613_v28 }
  0x22   :  { %178 = vperm.xlu1 %2486, %v2504_v52   ;;  %v2522_v14 = vpop.eup %2521  ;;  %2248 = vmatprep.subr.mxu1 %v612_v29  ;;  %v111_v52 = vld [vmem:[%s3787_s0 + $0x30] sm:$0xff] }
  0x23   :  { %173 = vperm.xlu0 %2485, %v2506_v55   ;;  %v2524_v15 = vpop.eup %2523  ;;  %2249 = vmatpush3.msra.mxu1 %v612_v29  ;;  %v124_v29 = vld [vmem:[%s3787_s0 + $0x98] sm:$0xff] }
  0x24   :  { %v2526_v16 = vpop.eup %2525  ;;  %2250 = vmatprep.subr.mxu1 %v611_v30 }
  0x25   :  { %v2528_v17 = vpop.eup %2527  ;;  %2251 = vmatpush3.msra.mxu1 %v611_v30  ;;  %v125_v30 = vld [vmem:[%s3787_s0 + $0xa0] sm:$0xff] }
  0x26   :  { %188 = vperm.xlu1 %2486, %v2508_v58   ;;  %v2530_v18 = vpop.eup %2529  ;;  %2252 = vmatprep.subr.mxu1 %v610_v31  ;;  %v113_v58 = vld [vmem:[%s3787_s0 + $0x40] sm:$0xff] }
  0x27   :  { %183 = vperm.xlu0 %2485, %v2510_v61   ;;  %v2532_v19 = vpop.eup %2531  ;;  %2253 = vmatpush3.msra.mxu1 %v610_v31 }
  0x28   :  { %v2534_v20 = vpop.eup %2533  ;;  %2254 = vmatprep.subr.mxu1 %v609_v32 }
  0x29   :  { %v2536_v21 = vpop.eup %2535  ;;  %2255 = vmatpush3.msra.mxu1 %v609_v32 }
  0x2a   :  { %198 = vperm.xlu1 %2486, %v2512_v0   ;;  %v2538_v22 = vpop.eup %2537  ;;  %2256 = vmatprep.subr.mxu1 %v608_v33  ;;  %v115_v0 = vld [vmem:[%s3787_s0 + $0x50] sm:$0xff] }
  0x2b   :  { %193 = vperm.xlu0 %2485, %v2514_v3   ;;  %2257 = vmatpush3.msra.mxu1 %v608_v33 }
  0x2c   :  { %2258 = vmatprep.subr.mxu1 %v607_v34 }
  0x2d   :  { %2259 = vmatpush3.msra.mxu1 %v607_v34 }
  0x2e   :  { %208 = vperm.xlu1 %2486, %v2516_v6   ;;  %v117_v6 = vld [vmem:[%s3787_s0 + $0x60] sm:$0xff] }
  0x2f   :  { %203 = vperm.xlu0 %2485, %v2518_v9  }
  0x32   :  { %218 = vperm.xlu1 %2486, %v2520_v12   ;;  %v119_v12 = vld [vmem:[%s3787_s0 + $0x70] sm:$0xff] }
  0x33   :  { %213 = vperm.xlu0 %2485, %v2522_v14  }
  0x36   :  { %228 = vperm.xlu1 %2486, %v2524_v15  }
  0x37   :  { %223 = vperm.xlu0 %2485, %v2526_v16  }
  0x3a   :  { %238 = vperm.xlu1 %2486, %v2528_v17   ;;  %v120_v17 = vld [vmem:[%s3787_s0 + $0x78] sm:$0xff] }
  0x3b   :  { %233 = vperm.xlu0 %2485, %v2530_v18   ;;  %v121_v18 = vld [vmem:[%s3787_s0 + $0x80] sm:$0xff] }
  0x3e   :  { %248 = vperm.xlu1 %2486, %v2532_v19  }
  0x3f   :  { %243 = vperm.xlu0 %2485, %v2534_v20  }
  0x42   :  { %258 = vperm.xlu1 %2486, %v2536_v21  }
  0x43   :  { %253 = vperm.xlu0 %2485, %v2538_v22  }
  0x8d   :  { %v144_v36 = vpop.permute.xlu1 %143 }
  0x8e   :  { %v134_v37 = vpop.permute.xlu0 %133  ;;  %v263_v42 = vmul.f32 %v144_v36, %v107_v38  ;;  %v127_v36 = vld [vmem:[%s3787_s0 + $0xb0] sm:$0xff] }
  0x8f   :  { %v261_v39 = vmul.f32 %v134_v37, %v105_v35  ;;  %v126_v35 = vld [vmem:[%s3787_s0 + $0xa8] sm:$0xff] }
  0x91   :  { %2197 = vmatprep.mubr.msk.f32.mxu0 %vm300_vm0, %v261_v39  ;;  %v149_v41 = vpop.permute.xlu1 %148 }
  0x92   :  { %v139_v43 = vpop.permute.xlu0 %138  ;;  %v264_v49 = vmul.f32 %v149_v41, %v108_v45  ;;  %v128_v41 = vld [vmem:[%s3787_s0 + $0xb8] sm:$0xff] }
  0x93   :  { %v262_v44 = vmul.f32 %v139_v43, %v106_v40 }
  0x95   :  { %2198 = vmatmul.mubr.msk.f32.vlgmr.msra.gmra.mxu0 %vm300_vm0, %v262_v44  ;;  %v159_v47 = vpop.permute.xlu1 %158 }
  0x96   :  { %2200 = vmatprep.mubr.msk.f32.mxu0 %vm300_vm0, %v263_v42  ;;  %v154_v48 = vpop.permute.xlu0 %153  ;;  %v266_v55 = vmul.f32 %v159_v47, %v110_v51  ;;  %v129_v42 = vld [vmem:[%s3787_s0 + $0xc0] sm:$0xff]  ;;  %v604_v51 = vld [vmem:[%s3791_s4 + $0x8] sm:$0xff] }
  0x97   :  { %v265_v50 = vmul.f32 %v154_v48, %v109_v46  ;;  %v130_v46 = vld [vmem:[%s3787_s0 + $0xc8] sm:$0xff] }
  0x99   :  { %2201 = vmatmul.mubr.msk.f32.gmra.mxu0 %vm300_vm0, %v264_v49  ;;  %v169_v53 = vpop.permute.xlu1 %168  ;;  %v606_v49 = vld [vmem:[%s3791_s4 + $0x18] sm:$0xff] }
  0x9a   :  { %2203 = vmatprep.mubr.msk.f32.mxu0 %vm300_vm0, %v265_v50  ;;  %v164_v54 = vpop.permute.xlu0 %163  ;;  %v268_v61 = vmul.f32 %v169_v53, %v112_v57  ;;  %2260 = vmatprep.subr.mxu1 %v606_v49  ;;  %v605_v50 = vld [vmem:[%s3791_s4 + $0x10] sm:$0xff]  ;;  %v2966_v53 = vld [vmem:[%s3789_s2] ss:$0 sm:$0xff] }
  0x9b   :  { %v267_v56 = vmul.f32 %v164_v54, %v111_v52  ;;  %2261 = vmatpush3.msra.mxu1 %v606_v49  ;;  %v603_v52 = vld [vmem:[%s3791_s4] sm:$0xff] }
  0x9c   :  { %2262 = vmatprep.subr.mxu1 %v605_v50 }
  0x9d   :  { %2204 = vmatmul.mubr.msk.f32.gmra.mxu0 %vm300_vm0, %v266_v55  ;;  %v179_v59 = vpop.permute.xlu1 %178  ;;  %2263 = vmatpush3.msra.mxu1 %v605_v50 }
  0x9e   :  { %2206 = vmatprep.mubr.msk.f32.mxu0 %vm300_vm0, %v267_v56  ;;  %v174_v60 = vpop.permute.xlu0 %173  ;;  %v270_v3 = vmul.f32 %v179_v59, %v114_v63  ;;  %2264 = vmatprep.subr.mxu1 %v604_v51 }
  0x9f   :  { %v269_v62 = vmul.f32 %v174_v60, %v113_v58  ;;  %2265 = vmatpush3.msra.mxu1 %v604_v51 }
  0xa0   :  { %2266 = vmatprep.subr.mxu1 %v603_v52 }
  0xa1   :  { %2207 = vmatmul.mubr.msk.f32.gmra.mxu0 %vm300_vm0, %v268_v61  ;;  %v189_v1 = vpop.permute.xlu1 %188  ;;  %2267 = vmatpush3.msra.mxu1 %v603_v52 }
  0xa2   :  { %2209 = vmatprep.mubr.msk.f32.mxu0 %vm300_vm0, %v269_v62  ;;  %v184_v2 = vpop.permute.xlu0 %183  ;;  %v272_v9 = vmul.f32 %v189_v1, %v116_v5 }
  0xa3   :  { %v271_v4 = vmul.f32 %v184_v2, %v115_v0 }
  0xa5   :  { %2210 = vmatmul.mubr.msk.f32.gmra.mxu0 %vm300_vm0, %v270_v3  ;;  %v199_v7 = vpop.permute.xlu1 %198 }
  0xa6   :  { %2212 = vmatprep.mubr.msk.f32.mxu0 %vm300_vm0, %v271_v4  ;;  %v194_v8 = vpop.permute.xlu0 %193  ;;  %v274_v15 = vmul.f32 %v199_v7, %v118_v11 }
  0xa7   :  { %v273_v10 = vmul.f32 %v194_v8, %v117_v6 }
  0xa9   :  { %2213 = vmatmul.mubr.msk.f32.gmra.mxu0 %vm300_vm0, %v272_v9  ;;  %v209_v13 = vpop.permute.xlu1 %208 }
  0xaa   :  { %2215 = vmatprep.mubr.msk.f32.mxu0 %vm300_vm0, %v273_v10  ;;  %v204_v14 = vpop.permute.xlu0 %203  ;;  %v276_v21 = vmul.f32 %v209_v13, %v120_v17 }
  0xab   :  { %v275_v16 = vmul.f32 %v204_v14, %v119_v12 }
  0xad   :  { %2216 = vmatmul.mubr.msk.f32.gmra.mxu0 %vm300_vm0, %v274_v15  ;;  %v219_v19 = vpop.permute.xlu1 %218 }
  0xae   :  { %2218 = vmatprep.mubr.msk.f32.mxu0 %vm300_vm0, %v275_v16  ;;  %v214_v20 = vpop.permute.xlu0 %213  ;;  %v278_v27 = vmul.f32 %v219_v19, %v122_v23 }
  0xaf   :  { %v277_v22 = vmul.f32 %v214_v20, %v121_v18 }
  0xb1   :  { %2219 = vmatmul.mubr.msk.f32.gmra.mxu0 %vm300_vm0, %v276_v21  ;;  %v229_v25 = vpop.permute.xlu1 %228 }
  0xb2   :  { %2221 = vmatprep.mubr.msk.f32.mxu0 %vm300_vm0, %v277_v22  ;;  %v224_v26 = vpop.permute.xlu0 %223  ;;  %v280_v33 = vmul.f32 %v229_v25, %v124_v29 }
  0xb3   :  { %v279_v28 = vmul.f32 %v224_v26, %v123_v24 }
  0xb5   :  { %2222 = vmatmul.mubr.msk.f32.gmra.mxu0 %vm300_vm0, %v278_v27  ;;  %v239_v31 = vpop.permute.xlu1 %238 }
  0xb6   :  { %2224 = vmatprep.mubr.msk.f32.mxu0 %vm300_vm0, %v279_v28  ;;  %v234_v32 = vpop.permute.xlu0 %233  ;;  %v282_v39 = vmul.f32 %v239_v31, %v126_v35 }
  0xb7   :  { %v281_v34 = vmul.f32 %v234_v32, %v125_v30 }
  0xb9   :  { %2225 = vmatmul.mubr.msk.f32.gmra.mxu0 %vm300_vm0, %v280_v33  ;;  %v249_v37 = vpop.permute.xlu1 %248 }
  0xba   :  { %2227 = vmatprep.mubr.msk.f32.mxu0 %vm300_vm0, %v281_v34  ;;  %v244_v38 = vpop.permute.xlu0 %243  ;;  %v284_v44 = vmul.f32 %v249_v37, %v128_v41 }
  0xbb   :  { %v283_v40 = vmul.f32 %v244_v38, %v127_v36 }
  0xbd   :  { %2228 = vmatmul.mubr.msk.f32.gmra.mxu0 %vm300_vm0, %v282_v39  ;;  %v259_v47 = vpop.permute.xlu1 %258 }
  0xbe   :  { %2230 = vmatprep.mubr.msk.f32.mxu0 %vm300_vm0, %v283_v40  ;;  %v254_v43 = vpop.permute.xlu0 %253  ;;  %v286_v48 = vmul.f32 %v259_v47, %v130_v46 }
  0xbf   :  { %v285_v45 = vmul.f32 %v254_v43, %v129_v42 }
  0xc1   :  { %2231 = vmatmul.mubr.msk.f32.gmra.mxu0 %vm300_vm0, %v284_v44 }
  0xc2   :  { %2233 = vmatprep.mubr.msk.f32.mxu0 %vm300_vm0, %v285_v45 }
  0xc5   :  { %2234 = vmatmul.mubr.msk.f32.gmra.mxu0 %vm300_vm0, %v286_v48 }
 0x155   :  { %v2199_v54 = vpop.f32.mrf.mxu0 }
 0x156   :  { %v451_v55 = vadd.f32 %v2199_v54, %v2966_v53 }
 0x157   :  { %v445_v56 = vpop.f32.mrf.mxu0 }
 0x158   :  { %v446_v57 = vadd.f32 %v2966_v53, %v445_v56  ;;  %v575_v60 = vmax.f32 %v451_v55, 0.0 }
 0x159   :  { %v2202_v58 = vpop.f32.mrf.mxu0 }
 0x15a   :  { %v574_v59 = vmax.f32 %v446_v57, 0.0  ;;  %v461_v61 = vadd.f32 %v2202_v58, %v2966_v53 }
 0x15b   :  { %v455_v62 = vpop.f32.mrf.mxu0 }
 0x15c   :  { %v456_v63 = vadd.f32 %v2966_v53, %v455_v62  ;;  %2268 = vmatprep.mubr.f32.mxu1 %v574_v59  ;;  %v577_v2 = vmax.f32 %v461_v61, 0.0 }
 0x15d   :  { %v2205_v0 = vpop.f32.mrf.mxu0  ;;  %2269 = vmatmul.mubr.f32.vlgmr.msra.gmra.mxu1 %v575_v60 }
 0x15e   :  { %v576_v1 = vmax.f32 %v456_v63, 0.0  ;;  %v471_v3 = vadd.f32 %v2205_v0, %v2966_v53 }
 0x15f   :  { %v465_v4 = vpop.f32.mrf.mxu0 }
 0x160   :  { %v466_v5 = vadd.f32 %v2966_v53, %v465_v4  ;;  %2271 = vmatprep.mubr.f32.mxu1 %v576_v1  ;;  %v579_v8 = vmax.f32 %v471_v3, 0.0 }
 0x161   :  { %v2208_v6 = vpop.f32.mrf.mxu0  ;;  %2272 = vmatmul.mubr.f32.gmra.mxu1 %v577_v2 }
 0x162   :  { %v578_v7 = vmax.f32 %v466_v5, 0.0  ;;  %v481_v9 = vadd.f32 %v2208_v6, %v2966_v53  ;;  %v2997_v5 = vld [vmem:[%s3789_s2 + $0x1] ss:$0 sm:$0xff] }
 0x163   :  { %v475_v10 = vpop.f32.mrf.mxu0 }
 0x164   :  { %v476_v11 = vadd.f32 %v2966_v53, %v475_v10  ;;  %2274 = vmatprep.mubr.f32.mxu1 %v578_v7  ;;  %v581_v14 = vmax.f32 %v481_v9, 0.0 }
 0x165   :  { %v2211_v12 = vpop.f32.mrf.mxu0  ;;  %2275 = vmatmul.mubr.f32.gmra.mxu1 %v579_v8 }
 0x166   :  { %v580_v13 = vmax.f32 %v476_v11, 0.0  ;;  %v491_v15 = vadd.f32 %v2211_v12, %v2966_v53 }
 0x167   :  { %v485_v16 = vpop.f32.mrf.mxu0 }
 0x168   :  { %v486_v17 = vadd.f32 %v2966_v53, %v485_v16  ;;  %2277 = vmatprep.mubr.f32.mxu1 %v580_v13  ;;  %v583_v20 = vmax.f32 %v491_v15, 0.0 }
 0x169   :  { %v2214_v18 = vpop.f32.mrf.mxu0  ;;  %2278 = vmatmul.mubr.f32.gmra.mxu1 %v581_v14 }
 0x16a   :  { %v582_v19 = vmax.f32 %v486_v17, 0.0  ;;  %v501_v21 = vadd.f32 %v2214_v18, %v2966_v53 }
 0x16b   :  { %v495_v22 = vpop.f32.mrf.mxu0 }
 0x16c   :  { %v496_v23 = vadd.f32 %v2966_v53, %v495_v22  ;;  %2280 = vmatprep.mubr.f32.mxu1 %v582_v19  ;;  %v585_v26 = vmax.f32 %v501_v21, 0.0 }
 0x16d   :  { %v2217_v24 = vpop.f32.mrf.mxu0  ;;  %2281 = vmatmul.mubr.f32.gmra.mxu1 %v583_v20 }
 0x16e   :  { %v584_v25 = vmax.f32 %v496_v23, 0.0  ;;  %v511_v27 = vadd.f32 %v2217_v24, %v2966_v53 }
 0x16f   :  { %v505_v28 = vpop.f32.mrf.mxu0 }
 0x170   :  { %v506_v29 = vadd.f32 %v2966_v53, %v505_v28  ;;  %2283 = vmatprep.mubr.f32.mxu1 %v584_v25  ;;  %v587_v32 = vmax.f32 %v511_v27, 0.0 }
 0x171   :  { %v2220_v30 = vpop.f32.mrf.mxu0  ;;  %2284 = vmatmul.mubr.f32.gmra.mxu1 %v585_v26 }
 0x172   :  { %v586_v31 = vmax.f32 %v506_v29, 0.0  ;;  %v521_v33 = vadd.f32 %v2220_v30, %v2966_v53 }
 0x173   :  { %v515_v34 = vpop.f32.mrf.mxu0 }
 0x174   :  { %v516_v35 = vadd.f32 %v2966_v53, %v515_v34  ;;  %2286 = vmatprep.mubr.f32.mxu1 %v586_v31  ;;  %v589_v38 = vmax.f32 %v521_v33, 0.0 }
 0x175   :  { %v2223_v36 = vpop.f32.mrf.mxu0  ;;  %2287 = vmatmul.mubr.f32.gmra.mxu1 %v587_v32 }
 0x176   :  { %v588_v37 = vmax.f32 %v516_v35, 0.0  ;;  %v531_v39 = vadd.f32 %v2223_v36, %v2966_v53 }
 0x177   :  { %v525_v40 = vpop.f32.mrf.mxu0 }
 0x178   :  { %v526_v41 = vadd.f32 %v2966_v53, %v525_v40  ;;  %2289 = vmatprep.mubr.f32.mxu1 %v588_v37  ;;  %v591_v44 = vmax.f32 %v531_v39, 0.0 }
 0x179   :  { %v2226_v42 = vpop.f32.mrf.mxu0  ;;  %2290 = vmatmul.mubr.f32.gmra.mxu1 %v589_v38 }
 0x17a   :  { %v590_v43 = vmax.f32 %v526_v41, 0.0  ;;  %v541_v45 = vadd.f32 %v2226_v42, %v2966_v53 }
 0x17b   :  { %v535_v46 = vpop.f32.mrf.mxu0 }
 0x17c   :  { %v536_v47 = vadd.f32 %v2966_v53, %v535_v46  ;;  %2292 = vmatprep.mubr.f32.mxu1 %v590_v43  ;;  %v593_v50 = vmax.f32 %v541_v45, 0.0 }
 0x17d   :  { %v2229_v48 = vpop.f32.mrf.mxu0  ;;  %2293 = vmatmul.mubr.f32.gmra.mxu1 %v591_v44 }
 0x17e   :  { %v592_v49 = vmax.f32 %v536_v47, 0.0  ;;  %v551_v51 = vadd.f32 %v2229_v48, %v2966_v53 }
 0x17f   :  { %v545_v52 = vpop.f32.mrf.mxu0 }
 0x180   :  { %v546_v54 = vadd.f32 %v2966_v53, %v545_v52  ;;  %2295 = vmatprep.mubr.f32.mxu1 %v592_v49  ;;  %v595_v57 = vmax.f32 %v551_v51, 0.0 }
 0x181   :  { %v2232_v55 = vpop.f32.mrf.mxu0  ;;  %2296 = vmatmul.mubr.f32.gmra.mxu1 %v593_v50 }
 0x182   :  { %v594_v56 = vmax.f32 %v546_v54, 0.0  ;;  %v561_v58 = vadd.f32 %v2232_v55, %v2966_v53 }
 0x183   :  { %v555_v59 = vpop.f32.mrf.mxu0 }
 0x184   :  { %v556_v60 = vadd.f32 %v2966_v53, %v555_v59  ;;  %2298 = vmatprep.mubr.f32.mxu1 %v594_v56  ;;  %v597_v63 = vmax.f32 %v561_v58, 0.0  ;;  %v1183_v58 = vld [vmem:[%s3792_s5 + $0x78] sm:$0xff]  ;;  %v1182_v59 = vld [vmem:[%s3792_s5 + $0x70] sm:$0xff] }
 0x185   :  { %v2235_v61 = vpop.f32.mrf.mxu0  ;;  %2299 = vmatmul.mubr.f32.gmra.mxu1 %v595_v57  ;;  %2307 = vmatprep.subr.mxu0 %v1183_v58 }
 0x186   :  { %v596_v62 = vmax.f32 %v556_v60, 0.0  ;;  %v571_v0 = vadd.f32 %v2235_v61, %v2966_v53  ;;  %2308 = vmatpush3.msra.mxu0 %v1183_v58  ;;  %v1181_v60 = vld [vmem:[%s3792_s5 + $0x68] sm:$0xff]  ;;  %v1180_v61 = vld [vmem:[%s3792_s5 + $0x60] sm:$0xff] }
 0x187   :  { %v565_v1 = vpop.f32.mrf.mxu0  ;;  %2309 = vmatprep.subr.mxu0 %v1182_v59 }
 0x188   :  { %v566_v2 = vadd.f32 %v2966_v53, %v565_v1  ;;  %2301 = vmatprep.mubr.f32.mxu1 %v596_v62  ;;  %v599_v4 = vmax.f32 %v571_v0, 0.0  ;;  %2310 = vmatpush3.msra.mxu0 %v1182_v59  ;;  %v1179_v62 = vld [vmem:[%s3792_s5 + $0x58] sm:$0xff]  ;;  %v1177_v0 = vld [vmem:[%s3792_s5 + $0x48] sm:$0xff] }
 0x189   :  { %2302 = vmatmul.mubr.f32.gmra.mxu1 %v597_v63  ;;  %2311 = vmatprep.subr.mxu0 %v1181_v60  ;;  %v1178_v63 = vld [vmem:[%s3792_s5 + $0x50] sm:$0xff] }
 0x18a   :  { %v598_v3 = vmax.f32 %v566_v2, 0.0  ;;  %2312 = vmatpush3.msra.mxu0 %v1181_v60 }
 0x18b   :  { %2313 = vmatprep.subr.mxu0 %v1180_v61 }
 0x18c   :  { %2304 = vmatprep.mubr.f32.mxu1 %v598_v3  ;;  %2314 = vmatpush3.msra.mxu0 %v1180_v61 }
 0x18d   :  { %2305 = vmatmul.mubr.f32.gmra.mxu1 %v599_v4  ;;  %2315 = vmatprep.subr.mxu0 %v1179_v62 }
 0x18e   :  { %2316 = vmatpush3.msra.mxu0 %v1179_v62 }
 0x18f   :  { %2317 = vmatprep.subr.mxu0 %v1178_v63 }
 0x190   :  { %2318 = vmatpush3.msra.mxu0 %v1178_v63 }
 0x191   :  { %2319 = vmatprep.subr.mxu0 %v1177_v0 }
 0x192   :  { %2320 = vmatpush3.msra.mxu0 %v1177_v0 }
 0x21d   :  { %v2270_v6 = vpop.f32.mrf.mxu1 }
 0x21e   :  { %v3000_v7 = vadd.f32 %v2270_v6, %v2997_v5 }
 0x21f   :  { %v689_v8 = vpop.f32.mrf.mxu1 }
 0x220   :  { %v3003_v9 = vadd.f32 %v2997_v5, %v689_v8  ;;  %820 = vadd.xlane.f32.xlu1 %v3000_v7 }
 0x221   :  { %v2273_v53 = vpop.f32.mrf.mxu1 }
 0x222   :  { %818 = vadd.xlane.f32.xlu0 %v3003_v9  ;;  %v3012_v14 = vadd.f32 %v2273_v53, %v2997_v5 }
 0x223   :  { %v699_v10 = vpop.f32.mrf.mxu1 }
 0x224   :  { %v3008_v11 = vadd.f32 %v2997_v5, %v699_v10 }
 0x225   :  { %v2276_v12 = vpop.f32.mrf.mxu1 }
 0x226   :  { %822 = vadd.xlane.f32.xlu0 %v3008_v11  ;;  %v3020_v18 = vadd.f32 %v2276_v12, %v2997_v5 }
 0x227   :  { %v709_v13 = vpop.f32.mrf.mxu1 }
 0x228   :  { %v3015_v15 = vadd.f32 %v2997_v5, %v709_v13 }
 0x229   :  { %v2279_v16 = vpop.f32.mrf.mxu1 }
 0x22a   :  { %824 = vadd.xlane.f32.xlu0 %v3012_v14  ;;  %826 = vadd.xlane.f32.xlu1 %v3015_v15  ;;  %v3028_v22 = vadd.f32 %v2279_v16, %v2997_v5 }
 0x22b   :  { %v719_v17 = vpop.f32.mrf.mxu1 }
 0x22c   :  { %v3023_v19 = vadd.f32 %v2997_v5, %v719_v17 }
 0x22d   :  { %v2282_v20 = vpop.f32.mrf.mxu1 }
 0x22e   :  { %828 = vadd.xlane.f32.xlu0 %v3020_v18  ;;  %830 = vadd.xlane.f32.xlu1 %v3023_v19  ;;  %v3036_v26 = vadd.f32 %v2282_v20, %v2997_v5 }
 0x22f   :  { %v729_v21 = vpop.f32.mrf.mxu1 }
 0x230   :  { %v3031_v23 = vadd.f32 %v2997_v5, %v729_v21 }
 0x231   :  { %v2285_v24 = vpop.f32.mrf.mxu1 }
 0x232   :  { %832 = vadd.xlane.f32.xlu0 %v3028_v22  ;;  %834 = vadd.xlane.f32.xlu1 %v3031_v23  ;;  %v3044_v30 = vadd.f32 %v2285_v24, %v2997_v5 }
 0x233   :  { %v739_v25 = vpop.f32.mrf.mxu1 }
 0x234   :  { %v3039_v27 = vadd.f32 %v2997_v5, %v739_v25 }
 0x235   :  { %v2288_v28 = vpop.f32.mrf.mxu1 }
 0x236   :  { %836 = vadd.xlane.f32.xlu0 %v3036_v26  ;;  %838 = vadd.xlane.f32.xlu1 %v3039_v27  ;;  %v3052_v34 = vadd.f32 %v2288_v28, %v2997_v5 }
 0x237   :  { %v749_v29 = vpop.f32.mrf.mxu1 }
 0x238   :  { %v3047_v31 = vadd.f32 %v2997_v5, %v749_v29 }
 0x239   :  { %v2291_v32 = vpop.f32.mrf.mxu1 }
 0x23a   :  { %840 = vadd.xlane.f32.xlu0 %v3044_v30  ;;  %842 = vadd.xlane.f32.xlu1 %v3047_v31  ;;  %v3060_v38 = vadd.f32 %v2291_v32, %v2997_v5 }
 0x23b   :  { %v759_v33 = vpop.f32.mrf.mxu1 }
 0x23c   :  { %v3055_v35 = vadd.f32 %v2997_v5, %v759_v33 }
 0x23d   :  { %v2294_v36 = vpop.f32.mrf.mxu1 }
 0x23e   :  { %844 = vadd.xlane.f32.xlu0 %v3052_v34  ;;  %846 = vadd.xlane.f32.xlu1 %v3055_v35  ;;  %v3068_v42 = vadd.f32 %v2294_v36, %v2997_v5 }
 0x23f   :  { %v769_v37 = vpop.f32.mrf.mxu1 }
 0x240   :  { %v3063_v39 = vadd.f32 %v2997_v5, %v769_v37 }
 0x241   :  { %v2297_v40 = vpop.f32.mrf.mxu1 }
 0x242   :  { %848 = vadd.xlane.f32.xlu0 %v3060_v38  ;;  %850 = vadd.xlane.f32.xlu1 %v3063_v39  ;;  %v3076_v46 = vadd.f32 %v2297_v40, %v2997_v5 }
 0x243   :  { %v779_v41 = vpop.f32.mrf.mxu1 }
 0x244   :  { %v3071_v43 = vadd.f32 %v2997_v5, %v779_v41 }
 0x245   :  { %v2300_v44 = vpop.f32.mrf.mxu1 }
 0x246   :  { %852 = vadd.xlane.f32.xlu0 %v3068_v42  ;;  %854 = vadd.xlane.f32.xlu1 %v3071_v43  ;;  %v3084_v50 = vadd.f32 %v2300_v44, %v2997_v5 }
 0x247   :  { %v789_v45 = vpop.f32.mrf.mxu1 }
 0x248   :  { %v3079_v47 = vadd.f32 %v2997_v5, %v789_v45 }
 0x249   :  { %v2303_v48 = vpop.f32.mrf.mxu1 }
 0x24a   :  { %856 = vadd.xlane.f32.xlu0 %v3076_v46  ;;  %858 = vadd.xlane.f32.xlu1 %v3079_v47  ;;  %v3092_v55 = vadd.f32 %v2303_v48, %v2997_v5 }
 0x24b   :  { %v799_v49 = vpop.f32.mrf.mxu1 }
 0x24c   :  { %v3087_v51 = vadd.f32 %v2997_v5, %v799_v49 }
 0x24d   :  { %v2306_v52 = vpop.f32.mrf.mxu1 }
 0x24e   :  { %860 = vadd.xlane.f32.xlu0 %v3084_v50  ;;  %862 = vadd.xlane.f32.xlu1 %v3087_v51  ;;  %v3100_v57 = vadd.f32 %v2306_v52, %v2997_v5 }
 0x24f   :  { %v809_v54 = vpop.f32.mrf.mxu1 }
 0x250   :  { %v3095_v56 = vadd.f32 %v2997_v5, %v809_v54 }
 0x252   :  { %864 = vadd.xlane.f32.xlu0 %v3092_v55  ;;  %866 = vadd.xlane.f32.xlu1 %v3095_v56 }
 0x256   :  { %868 = vadd.xlane.f32.xlu0 %v3100_v57 }
 0x2a9   :  { %v821_v1 = vpop.xlane.xlu1 %820 }
 0x2aa   :  { %v872_v2 = vmul.f32 0.0078125, %v821_v1 }
 0x2ab   :  { %v819_v3 = vpop.xlane.xlu0 %818 }
 0x2ac   :  { %v871_v4 = vmul.f32 0.0078125, %v819_v3  ;;  %v3125_v5 = vsub.f32 %v3000_v7, %v872_v2 }
 0x2ae   :  { %v924_v6 = vmul.f32 %v3125_v5, %v3125_v5  ;;  %v3130_v8 = vsub.f32 %v3003_v9, %v871_v4  ;;  %v1174_v4 = vld [vmem:[%s3792_s5 + $0x30] sm:$0xff] }
 0x2af   :  { %v823_v53 = vpop.xlane.xlu0 %822 }
 0x2b0   :  { %v873_v10 = vmul.f32 0.0078125, %v823_v53  ;;  %951 = vadd.xlane.f32.xlu0 %v924_v6  ;;  %v923_v12 = vmul.f32 %v3130_v8, %v3130_v8 }
 0x2b2   :  { %949 = vadd.xlane.f32.xlu1 %v923_v12  ;;  %v3135_v13 = vsub.f32 %v3008_v11, %v873_v10 }
 0x2b3   :  { %v827_v16 = vpop.xlane.xlu1 %826  ;;  %v825_v17 = vpop.xlane.xlu0 %824 }
 0x2b4   :  { %v875_v7 = vmul.f32 0.0078125, %v827_v16  ;;  %v874_v20 = vmul.f32 0.0078125, %v825_v17  ;;  %v925_v21 = vmul.f32 %v3135_v13, %v3135_v13 }
 0x2b6   :  { %953 = vadd.xlane.f32.xlu1 %v925_v21  ;;  %v3140_v9 = vsub.f32 %v3015_v15, %v875_v7  ;;  %v3143_v24 = vsub.f32 %v3012_v14, %v874_v20 }
 0x2b7   :  { %v831_v25 = vpop.xlane.xlu1 %830  ;;  %v829_v28 = vpop.xlane.xlu0 %828 }
 0x2b8   :  { %v877_v29 = vmul.f32 0.0078125, %v831_v25  ;;  %v876_v32 = vmul.f32 0.0078125, %v829_v28  ;;  %v927_v11 = vmul.f32 %v3140_v9, %v3140_v9  ;;  %v926_v33 = vmul.f32 %v3143_v24, %v3143_v24  ;;  %v1172_v25 = vld [vmem:[%s3792_s5 + $0x20] sm:$0xff] }
 0x2ba   :  { %v3150_v36 = vsub.f32 %v3023_v19, %v877_v29  ;;  %957 = vadd.xlane.f32.xlu1 %v927_v11  ;;  %955 = vadd.xlane.f32.xlu0 %v926_v33  ;;  %v3153_v15 = vsub.f32 %v3020_v18, %v876_v32 }
 0x2bb   :  { %v835_v14 = vpop.xlane.xlu1 %834  ;;  %v833_v37 = vpop.xlane.xlu0 %832 }
 0x2bc   :  { %v879_v40 = vmul.f32 0.0078125, %v835_v14  ;;  %v878_v41 = vmul.f32 0.0078125, %v833_v37  ;;  %v929_v44 = vmul.f32 %v3150_v36, %v3150_v36  ;;  %v928_v45 = vmul.f32 %v3153_v15, %v3153_v15 }
 0x2be   :  { %v3160_v48 = vsub.f32 %v3031_v23, %v879_v40  ;;  %v3163_v19 = vsub.f32 %v3028_v22, %v878_v41  ;;  %961 = vadd.xlane.f32.xlu1 %v929_v44  ;;  %959 = vadd.xlane.f32.xlu0 %v928_v45  ;;  %v1176_v22 = vld [vmem:[%s3792_s5 + $0x40] sm:$0xff] }
 0x2bf   :  { %v839_v18 = vpop.xlane.xlu1 %838  ;;  %v837_v49 = vpop.xlane.xlu0 %836  ;;  %2321 = vmatprep.subr.mxu0 %v1176_v22 }
 0x2c0   :  { %v881_v52 = vmul.f32 0.0078125, %v839_v18  ;;  %v880_v54 = vmul.f32 0.0078125, %v837_v49  ;;  %v931_v58 = vmul.f32 %v3160_v48, %v3160_v48  ;;  %v930_v59 = vmul.f32 %v3163_v19, %v3163_v19  ;;  %2322 = vmatpush3.msra.mxu0 %v1176_v22  ;;  %v1169_v49 = vld [vmem:[%s3792_s5 + $0x8] sm:$0xff] }
 0x2c2   :  { %v3170_v60 = vsub.f32 %v3039_v27, %v881_v52  ;;  %v3173_v23 = vsub.f32 %v3036_v26, %v880_v54  ;;  %965 = vadd.xlane.f32.xlu1 %v931_v58  ;;  %963 = vadd.xlane.f32.xlu0 %v930_v59  ;;  %v1175_v26 = vld [vmem:[%s3792_s5 + $0x38] sm:$0xff] }
 0x2c3   :  { %v843_v61 = vpop.xlane.xlu1 %842  ;;  %v841_v62 = vpop.xlane.xlu0 %840  ;;  %2323 = vmatprep.subr.mxu0 %v1175_v26 }
 0x2c4   :  { %v883_v63 = vmul.f32 0.0078125, %v843_v61  ;;  %v882_v0 = vmul.f32 0.0078125, %v841_v62  ;;  %v933_v1 = vmul.f32 %v3170_v60, %v3170_v60  ;;  %v932_v27 = vmul.f32 %v3173_v23, %v3173_v23  ;;  %2324 = vmatpush3.msra.mxu0 %v1175_v26 }
 0x2c5   :  { %2325 = vmatprep.subr.mxu0 %v1174_v4 }
 0x2c6   :  { %v3186_v2 = vsub.f32 %v3047_v31, %v883_v63  ;;  %v3189_v3 = vsub.f32 %v3044_v30, %v882_v0  ;;  %969 = vadd.xlane.f32.xlu1 %v933_v1  ;;  %967 = vadd.xlane.f32.xlu0 %v932_v27  ;;  %v1173_v30 = vld [vmem:[%s3792_s5 + $0x28] sm:$0xff] }
 0x2c7   :  { %v847_v6 = vpop.xlane.xlu1 %846  ;;  %v845_v53 = vpop.xlane.xlu0 %844  ;;  %2326 = vmatpush3.msra.mxu0 %v1174_v4 }
 0x2c8   :  { %v885_v10 = vmul.f32 0.0078125, %v847_v6  ;;  %v884_v12 = vmul.f32 0.0078125, %v845_v53  ;;  %v935_v16 = vmul.f32 %v3186_v2, %v3186_v2  ;;  %v934_v31 = vmul.f32 %v3189_v3, %v3189_v3  ;;  %2327 = vmatprep.subr.mxu0 %v1173_v30 }
 0x2c9   :  { %2328 = vmatpush3.msra.mxu0 %v1173_v30 }
 0x2ca   :  { %v3202_v17 = vsub.f32 %v3055_v35, %v885_v10  ;;  %v3205_v7 = vsub.f32 %v3052_v34, %v884_v12  ;;  %973 = vadd.xlane.f32.xlu1 %v935_v16  ;;  %971 = vadd.xlane.f32.xlu0 %v934_v31  ;;  %v1171_v34 = vld [vmem:[%s3792_s5 + $0x18] sm:$0xff] }
 0x2cb   :  { %v851_v20 = vpop.xlane.xlu1 %850  ;;  %v849_v21 = vpop.xlane.xlu0 %848  ;;  %2329 = vmatprep.subr.mxu0 %v1172_v25 }
 0x2cc   :  { %v887_v28 = vmul.f32 0.0078125, %v851_v20  ;;  %v886_v29 = vmul.f32 0.0078125, %v849_v21  ;;  %v937_v32 = vmul.f32 %v3202_v17, %v3202_v17  ;;  %v936_v35 = vmul.f32 %v3205_v7, %v3205_v7  ;;  %2330 = vmatpush3.msra.mxu0 %v1172_v25 }
 0x2cd   :  { %2331 = vmatprep.subr.mxu0 %v1171_v34 }
 0x2ce   :  { %v3218_v11 = vsub.f32 %v3063_v39, %v887_v28  ;;  %v3221_v33 = vsub.f32 %v3060_v38, %v886_v29  ;;  %977 = vadd.xlane.f32.xlu1 %v937_v32  ;;  %975 = vadd.xlane.f32.xlu0 %v936_v35  ;;  %v1170_v39 = vld [vmem:[%s3792_s5 + $0x10] sm:$0xff] }
 0x2cf   :  { %v855_v14 = vpop.xlane.xlu1 %854  ;;  %v853_v37 = vpop.xlane.xlu0 %852  ;;  %2332 = vmatpush3.msra.mxu0 %v1171_v34 }
 0x2d0   :  { %v889_v40 = vmul.f32 0.0078125, %v855_v14  ;;  %v888_v41 = vmul.f32 0.0078125, %v853_v37  ;;  %v939_v44 = vmul.f32 %v3218_v11, %v3218_v11  ;;  %v938_v45 = vmul.f32 %v3221_v33, %v3221_v33  ;;  %2333 = vmatprep.subr.mxu0 %v1170_v39 }
 0x2d1   :  { %2334 = vmatpush3.msra.mxu0 %v1170_v39 }
 0x2d2   :  { %v3231_v38 = vsub.f32 %v3071_v43, %v889_v40  ;;  %v3234_v18 = vsub.f32 %v3068_v42, %v888_v41  ;;  %981 = vadd.xlane.f32.xlu1 %v939_v44  ;;  %979 = vadd.xlane.f32.xlu0 %v938_v45  ;;  %v1168_v42 = vld [vmem:[%s3792_s5] sm:$0xff] }
 0x2d3   :  { %v859_v52 = vpop.xlane.xlu1 %858  ;;  %v857_v54 = vpop.xlane.xlu0 %856  ;;  %2335 = vmatprep.subr.mxu0 %v1169_v49 }
 0x2d4   :  { %v891_v58 = vmul.f32 0.0078125, %v859_v52  ;;  %v890_v59 = vmul.f32 0.0078125, %v857_v54  ;;  %v941_v22 = vmul.f32 %v3231_v38, %v3231_v38  ;;  %v940_v43 = vmul.f32 %v3234_v18, %v3234_v18  ;;  %2336 = vmatpush3.msra.mxu0 %v1169_v49 }
 0x2d5   :  { %2337 = vmatprep.subr.mxu0 %v1168_v42 }
 0x2d6   :  { %v3247_v61 = vsub.f32 %v3079_v47, %v891_v58  ;;  %v3250_v62 = vsub.f32 %v3076_v46, %v890_v59  ;;  %985 = vadd.xlane.f32.xlu1 %v941_v22  ;;  %983 = vadd.xlane.f32.xlu0 %v940_v43  ;;  %v3284_v43 = vld [vmem:[%s3789_s2 + $0x2] ss:$0 sm:$0xff] }
 0x2d7   :  { %v863_v63 = vpop.xlane.xlu1 %862  ;;  %v861_v0 = vpop.xlane.xlu0 %860  ;;  %2338 = vmatpush3.msra.mxu0 %v1168_v42 }
 0x2d8   :  { %v893_v1 = vmul.f32 0.0078125, %v863_v63  ;;  %v892_v27 = vmul.f32 0.0078125, %v861_v0  ;;  %v943_v26 = vmul.f32 %v3247_v61, %v3247_v61  ;;  %v942_v4 = vmul.f32 %v3250_v62, %v3250_v62 }
 0x2da   :  { %v3257_v47 = vsub.f32 %v3087_v51, %v893_v1  ;;  %v3260_v46 = vsub.f32 %v3084_v50, %v892_v27  ;;  %989 = vadd.xlane.f32.xlu1 %v943_v26  ;;  %987 = vadd.xlane.f32.xlu0 %v942_v4 }
 0x2db   :  { %v867_v6 = vpop.xlane.xlu1 %866  ;;  %v865_v53 = vpop.xlane.xlu0 %864 }
 0x2dc   :  { %v895_v10 = vmul.f32 0.0078125, %v867_v6  ;;  %v894_v12 = vmul.f32 0.0078125, %v865_v53  ;;  %v945_v16 = vmul.f32 %v3257_v47, %v3257_v47  ;;  %v944_v31 = vmul.f32 %v3260_v46, %v3260_v46 }
 0x2de   :  { %v3267_v30 = vsub.f32 %v3095_v56, %v895_v10  ;;  %v3270_v51 = vsub.f32 %v3092_v55, %v894_v12  ;;  %993 = vadd.xlane.f32.xlu1 %v945_v16  ;;  %991 = vadd.xlane.f32.xlu0 %v944_v31 }
 0x2df   :  { %v869_v50 = vpop.xlane.xlu0 %868 }
 0x2e0   :  { %v896_v20 = vmul.f32 0.0078125, %v869_v50  ;;  %v947_v21 = vmul.f32 %v3267_v30, %v3267_v30  ;;  %v946_v25 = vmul.f32 %v3270_v51, %v3270_v51 }
 0x2e2   :  { %v3277_v28 = vsub.f32 %v3100_v57, %v896_v20  ;;  %997 = vadd.xlane.f32.xlu1 %v947_v21  ;;  %995 = vadd.xlane.f32.xlu0 %v946_v25 }
 0x2e4   :  { %v948_v56 = vmul.f32 %v3277_v28, %v3277_v28 }
 0x2e6   :  { %999 = vadd.xlane.f32.xlu0 %v948_v56  ;;  %v3292_v56 = vld [vmem:[%s3789_s2 + $0x3] ss:$0 sm:$0xff] }
 0x339   :  { %v952_v55 = vpop.xlane.xlu0 %951 }
 0x33a   :  { %v1002_v29 = vmul.f32 0.0078125, %v952_v55 }
 0x33b   :  { %v950_v32 = vpop.xlane.xlu1 %949 }
 0x33c   :  { %v1028_v35 = vadd.f32 1e-05, %v1002_v29  ;;  %v1001_v34 = vmul.f32 0.0078125, %v950_v32 }
 0x33e   :  { %2539 = vrsqrt.f32 %v1028_v35  ;;  %v1027_v14 = vadd.f32 1e-05, %v1001_v34 }
 0x33f   :  { %v954_v37 = vpop.xlane.xlu1 %953 }
 0x340   :  { %2541 = vrsqrt.f32 %v1027_v14  ;;  %v1003_v40 = vmul.f32 0.0078125, %v954_v37 }
 0x342   :  { %v1029_v41 = vadd.f32 1e-05, %v1003_v40 }
 0x343   :  { %v958_v44 = vpop.xlane.xlu1 %957  ;;  %v956_v57 = vpop.xlane.xlu0 %955 }
 0x344   :  { %2543 = vrsqrt.f32 %v1029_v41  ;;  %v1005_v45 = vmul.f32 0.0078125, %v958_v44  ;;  %v1004_v39 = vmul.f32 0.0078125, %v956_v57 }
 0x346   :  { %v1031_v49 = vadd.f32 1e-05, %v1005_v45  ;;  %v1030_v52 = vadd.f32 1e-05, %v1004_v39 }
 0x347   :  { %v962_v54 = vpop.xlane.xlu1 %961  ;;  %v960_v58 = vpop.xlane.xlu0 %959 }
 0x348   :  { %2545 = vrsqrt.f32 %v1031_v49  ;;  %v1007_v59 = vmul.f32 0.0078125, %v962_v54  ;;  %v1006_v22 = vmul.f32 0.0078125, %v960_v58 }
 0x349   :  { %2547 = vrsqrt.f32 %v1030_v52 }
 0x34a   :  { %v1033_v42 = vadd.f32 1e-05, %v1007_v59  ;;  %v1032_v63 = vadd.f32 1e-05, %v1006_v22 }
 0x34b   :  { %v2540_v0 = vpop.eup %2539  ;;  %v966_v1 = vpop.xlane.xlu1 %965 }
 0x34c   :  { %v964_v27 = vpop.xlane.xlu0 %963  ;;  %v1084_v26 = vmul.f32 %v2540_v0, %v3284_v43  ;;  %2549 = vrsqrt.f32 %v1033_v42  ;;  %v1009_v4 = vmul.f32 0.0078125, %v966_v1 }
 0x34d   :  { %v1008_v6 = vmul.f32 0.0078125, %v964_v27  ;;  %v2542_v53 = vpop.eup %2541  ;;  %2551 = vrsqrt.f32 %v1032_v63 }
 0x34e   :  { %v1035_v10 = vadd.f32 1e-05, %v1009_v4  ;;  %v1083_v16 = vmul.f32 %v2542_v53, %v3284_v43  ;;  %v1110_v20 = vmul.f32 %v1084_v26, %v3125_v5 }
 0x34f   :  { %v1034_v12 = vadd.f32 1e-05, %v1008_v6  ;;  %v970_v31 = vpop.xlane.xlu1 %969 }
 0x350   :  { %v968_v50 = vpop.xlane.xlu0 %967  ;;  %2553 = vrsqrt.f32 %v1035_v10  ;;  %v1011_v21 = vmul.f32 0.0078125, %v970_v31  ;;  %v1109_v55 = vmul.f32 %v1083_v16, %v3130_v8  ;;  %v1140_v40 = vadd.f32 %v3292_v56, %v1110_v20 }
 0x351   :  { %v1010_v25 = vmul.f32 0.0078125, %v968_v50  ;;  %v2544_v29 = vpop.eup %2543  ;;  %2555 = vrsqrt.f32 %v1034_v12 }
 0x352   :  { %v1037_v32 = vadd.f32 1e-05, %v1011_v21  ;;  %v1139_v34 = vadd.f32 %v3292_v56, %v1109_v55  ;;  %v1085_v14 = vmul.f32 %v2544_v29, %v3284_v43 }
 0x353   :  { %v1036_v35 = vadd.f32 1e-05, %v1010_v25  ;;  %v974_v37 = vpop.xlane.xlu1 %973 }
 0x354   :  { %v972_v5 = vpop.xlane.xlu0 %971  ;;  %2557 = vrsqrt.f32 %v1037_v32  ;;  %v1013_v41 = vmul.f32 0.0078125, %v974_v37  ;;  %2339 = vmatprep.mubr.f32.mxu0 %v1139_v34  ;;  %v1111_v57 = vmul.f32 %v1085_v14, %v3135_v13 }
 0x355   :  { %v1012_v44 = vmul.f32 0.0078125, %v972_v5  ;;  %v2546_v45 = vpop.eup %2545  ;;  %2559 = vrsqrt.f32 %v1036_v35  ;;  %2340 = vmatmul.mubr.f32.vlgmr.msra.gmra.mxu0 %v1140_v40 }
 0x356   :  { %v2548_v8 = vpop.eup %2547  ;;  %v1039_v39 = vadd.f32 1e-05, %v1013_v41  ;;  %v1141_v52 = vadd.f32 %v3292_v56, %v1111_v57  ;;  %v1087_v54 = vmul.f32 %v2546_v45, %v3284_v43 }
 0x357   :  { %v1038_v49 = vadd.f32 1e-05, %v1012_v44  ;;  %v978_v58 = vpop.xlane.xlu1 %977  ;;  %v1086_v22 = vmul.f32 %v2548_v8, %v3284_v43 }
 0x358   :  { %v976_v59 = vpop.xlane.xlu0 %975  ;;  %2561 = vrsqrt.f32 %v1039_v39  ;;  %v1015_v42 = vmul.f32 0.0078125, %v978_v58  ;;  %2342 = vmatprep.mubr.f32.mxu0 %v1141_v52  ;;  %v1113_v13 = vmul.f32 %v1087_v54, %v3140_v9 }
 0x359   :  { %v1014_v63 = vmul.f32 0.0078125, %v976_v59  ;;  %v2550_v0 = vpop.eup %2549  ;;  %2563 = vrsqrt.f32 %v1038_v49  ;;  %v1112_v1 = vmul.f32 %v1086_v22, %v3143_v24 }
 0x35a   :  { %v2552_v27 = vpop.eup %2551  ;;  %v1041_v26 = vadd.f32 1e-05, %v1015_v42  ;;  %v1143_v6 = vadd.f32 %v3292_v56, %v1113_v13  ;;  %v1089_v53 = vmul.f32 %v2550_v0, %v3284_v43 }
 0x35b   :  { %v1040_v4 = vadd.f32 1e-05, %v1014_v63  ;;  %v982_v10 = vpop.xlane.xlu1 %981  ;;  %v1142_v16 = vadd.f32 %v3292_v56, %v1112_v1  ;;  %v1088_v31 = vmul.f32 %v2552_v27, %v3284_v43 }
 0x35c   :  { %v980_v12 = vpop.xlane.xlu0 %979  ;;  %2565 = vrsqrt.f32 %v1041_v26  ;;  %v1017_v50 = vmul.f32 0.0078125, %v982_v10  ;;  %v1115_v20 = vmul.f32 %v1089_v53, %v3150_v36 }
 0x35d   :  { %v1016_v9 = vmul.f32 0.0078125, %v980_v12  ;;  %v2554_v21 = vpop.eup %2553  ;;  %2567 = vrsqrt.f32 %v1040_v4  ;;  %2343 = vmatmul.mubr.f32.gmra.mxu0 %v1142_v16  ;;  %v1114_v24 = vmul.f32 %v1088_v31, %v3153_v15 }
 0x35e   :  { %v2556_v25 = vpop.eup %2555  ;;  %v1043_v55 = vadd.f32 1e-05, %v1017_v50  ;;  %2345 = vmatprep.mubr.f32.mxu0 %v1143_v6  ;;  %v1145_v32 = vadd.f32 %v3292_v56, %v1115_v20  ;;  %v1091_v35 = vmul.f32 %v2554_v21, %v3284_v43 }
 0x35f   :  { %v1042_v29 = vadd.f32 1e-05, %v1016_v9  ;;  %v986_v34 = vpop.xlane.xlu1 %985  ;;  %v1144_v37 = vadd.f32 %v3292_v56, %v1114_v24  ;;  %v1090_v5 = vmul.f32 %v2556_v25, %v3284_v43 }
 0x360   :  { %v984_v14 = vpop.xlane.xlu0 %983  ;;  %2569 = vrsqrt.f32 %v1043_v55  ;;  %v1019_v36 = vmul.f32 0.0078125, %v986_v34  ;;  %v1117_v41 = vmul.f32 %v1091_v35, %v3160_v48 }
 0x361   :  { %v1018_v40 = vmul.f32 0.0078125, %v984_v14  ;;  %v2558_v15 = vpop.eup %2557  ;;  %2571 = vrsqrt.f32 %v1042_v29  ;;  %2346 = vmatmul.mubr.f32.gmra.mxu0 %v1144_v37  ;;  %v1116_v44 = vmul.f32 %v1090_v5, %v3163_v19 }
 0x362   :  { %v2560_v57 = vpop.eup %2559  ;;  %v1045_v45 = vadd.f32 1e-05, %v1019_v36  ;;  %2348 = vmatprep.mubr.f32.mxu0 %v1145_v32  ;;  %v1147_v39 = vadd.f32 %v3292_v56, %v1117_v41  ;;  %v1093_v49 = vmul.f32 %v2558_v15, %v3284_v43 }
 0x363   :  { %v1044_v8 = vadd.f32 1e-05, %v1018_v40  ;;  %v990_v52 = vpop.xlane.xlu1 %989  ;;  %v1146_v58 = vadd.f32 %v3292_v56, %v1116_v44  ;;  %v1092_v59 = vmul.f32 %v2560_v57, %v3284_v43 }
 0x364   :  { %v988_v54 = vpop.xlane.xlu0 %987  ;;  %2573 = vrsqrt.f32 %v1045_v45  ;;  %v1021_v48 = vmul.f32 0.0078125, %v990_v52  ;;  %v1119_v42 = vmul.f32 %v1093_v49, %v3170_v60 }
 0x365   :  { %v1020_v22 = vmul.f32 0.0078125, %v988_v54  ;;  %v2562_v19 = vpop.eup %2561  ;;  %2575 = vrsqrt.f32 %v1044_v8  ;;  %2349 = vmatmul.mubr.f32.gmra.mxu0 %v1146_v58  ;;  %v1118_v63 = vmul.f32 %v1092_v59, %v3173_v23 }
 0x366   :  { %v2564_v13 = vpop.eup %2563  ;;  %v1047_v0 = vadd.f32 1e-05, %v1021_v48  ;;  %2351 = vmatprep.mubr.f32.mxu0 %v1147_v39  ;;  %v1149_v27 = vadd.f32 %v3292_v56, %v1119_v42  ;;  %v1095_v26 = vmul.f32 %v2562_v19, %v3284_v43 }
 0x367   :  { %v1046_v1 = vadd.f32 1e-05, %v1020_v22  ;;  %v994_v4 = vpop.xlane.xlu1 %993  ;;  %v1148_v53 = vadd.f32 %v3292_v56, %v1118_v63  ;;  %v1094_v10 = vmul.f32 %v2564_v13, %v3284_v43 }
 0x368   :  { %v992_v6 = vpop.xlane.xlu0 %991  ;;  %2577 = vrsqrt.f32 %v1047_v0  ;;  %v1023_v60 = vmul.f32 0.0078125, %v994_v4  ;;  %v1121_v16 = vmul.f32 %v1095_v26, %v3186_v2 }
 0x369   :  { %v1022_v12 = vmul.f32 0.0078125, %v992_v6  ;;  %v2566_v23 = vpop.eup %2565  ;;  %2579 = vrsqrt.f32 %v1046_v1  ;;  %2352 = vmatmul.mubr.f32.gmra.mxu0 %v1148_v53  ;;  %v1120_v31 = vmul.f32 %v1094_v10, %v3189_v3 }
 0x36a   :  { %v2568_v50 = vpop.eup %2567  ;;  %v1049_v9 = vadd.f32 1e-05, %v1023_v60  ;;  %2354 = vmatprep.mubr.f32.mxu0 %v1149_v27  ;;  %v1151_v21 = vadd.f32 %v3292_v56, %v1121_v16  ;;  %v1097_v24 = vmul.f32 %v2566_v23, %v3284_v43 }
 0x36b   :  { %v1048_v20 = vadd.f32 1e-05, %v1022_v12  ;;  %v998_v25 = vpop.xlane.xlu1 %997  ;;  %v1150_v29 = vadd.f32 %v3292_v56, %v1120_v31  ;;  %v1096_v32 = vmul.f32 %v2568_v50, %v3284_v43 }
 0x36c   :  { %v996_v55 = vpop.xlane.xlu0 %995  ;;  %2581 = vrsqrt.f32 %v1049_v9  ;;  %v1025_v2 = vmul.f32 0.0078125, %v998_v25  ;;  %v1123_v34 = vmul.f32 %v1097_v24, %v3202_v17 }
 0x36d   :  { %v1024_v35 = vmul.f32 0.0078125, %v996_v55  ;;  %v2570_v3 = vpop.eup %2569  ;;  %2583 = vrsqrt.f32 %v1048_v20  ;;  %2355 = vmatmul.mubr.f32.gmra.mxu0 %v1150_v29  ;;  %v1122_v14 = vmul.f32 %v1096_v32, %v3205_v7 }
 0x36e   :  { %v2572_v37 = vpop.eup %2571  ;;  %v1051_v5 = vadd.f32 1e-05, %v1025_v2  ;;  %2357 = vmatprep.mubr.f32.mxu0 %v1151_v21  ;;  %v1153_v40 = vadd.f32 %v3292_v56, %v1123_v34  ;;  %v1099_v41 = vmul.f32 %v2570_v3, %v3284_v43 }
 0x36f   :  { %v1050_v36 = vadd.f32 1e-05, %v1024_v35  ;;  %v1152_v44 = vadd.f32 %v3292_v56, %v1122_v14  ;;  %v1098_v57 = vmul.f32 %v2572_v37, %v3284_v43 }
 0x370   :  { %v1000_v15 = vpop.xlane.xlu0 %999  ;;  %2585 = vrsqrt.f32 %v1051_v5  ;;  %v1125_v45 = vmul.f32 %v1099_v41, %v3218_v11 }
 0x371   :  { %v1026_v17 = vmul.f32 0.0078125, %v1000_v15  ;;  %v2574_v8 = vpop.eup %2573  ;;  %2587 = vrsqrt.f32 %v1050_v36  ;;  %2358 = vmatmul.mubr.f32.gmra.mxu0 %v1152_v44  ;;  %v1124_v7 = vmul.f32 %v1098_v57, %v3221_v33 }
 0x372   :  { %v2576_v39 = vpop.eup %2575  ;;  %2360 = vmatprep.mubr.f32.mxu0 %v1153_v40  ;;  %v1155_v52 = vadd.f32 %v3292_v56, %v1125_v45  ;;  %v1101_v54 = vmul.f32 %v2574_v8, %v3284_v43 }
 0x373   :  { %v1052_v49 = vadd.f32 1e-05, %v1026_v17  ;;  %v1154_v58 = vadd.f32 %v3292_v56, %v1124_v7  ;;  %v1100_v59 = vmul.f32 %v2576_v39, %v3284_v43 }
 0x374   :  { %v1127_v48 = vmul.f32 %v1101_v54, %v3231_v38 }
 0x375   :  { %2589 = vrsqrt.f32 %v1052_v49  ;;  %v2578_v11 = vpop.eup %2577  ;;  %2361 = vmatmul.mubr.f32.gmra.mxu0 %v1154_v58  ;;  %v1126_v22 = vmul.f32 %v1100_v59, %v3234_v18 }
 0x376   :  { %v2580_v42 = vpop.eup %2579  ;;  %2363 = vmatprep.mubr.f32.mxu0 %v1155_v52  ;;  %v1157_v33 = vadd.f32 %v3292_v56, %v1127_v48  ;;  %v1103_v19 = vmul.f32 %v2578_v11, %v3284_v43 }
 0x377   :  { %v1156_v63 = vadd.f32 %v3292_v56, %v1126_v22  ;;  %v1102_v13 = vmul.f32 %v2580_v42, %v3284_v43 }
 0x378   :  { %v1129_v0 = vmul.f32 %v1103_v19, %v3247_v61 }
 0x379   :  { %v2582_v1 = vpop.eup %2581  ;;  %2364 = vmatmul.mubr.f32.gmra.mxu0 %v1156_v63  ;;  %v1128_v38 = vmul.f32 %v1102_v13, %v3250_v62 }
 0x37a   :  { %v2584_v27 = vpop.eup %2583  ;;  %2366 = vmatprep.mubr.f32.mxu0 %v1157_v33  ;;  %v1159_v18 = vadd.f32 %v3292_v56, %v1129_v0  ;;  %v1105_v26 = vmul.f32 %v2582_v1, %v3284_v43 }
 0x37b   :  { %v1158_v4 = vadd.f32 %v3292_v56, %v1128_v38  ;;  %v1104_v6 = vmul.f32 %v2584_v27, %v3284_v43 }
 0x37c   :  { %v1131_v53 = vmul.f32 %v1105_v26, %v3257_v47 }
 0x37d   :  { %v2586_v10 = vpop.eup %2585  ;;  %2367 = vmatmul.mubr.f32.gmra.mxu0 %v1158_v4  ;;  %v1130_v61 = vmul.f32 %v1104_v6, %v3260_v46 }
 0x37e   :  { %v2588_v60 = vpop.eup %2587  ;;  %2369 = vmatprep.mubr.f32.mxu0 %v1159_v18  ;;  %v1161_v62 = vadd.f32 %v3292_v56, %v1131_v53  ;;  %v1107_v12 = vmul.f32 %v2586_v10, %v3284_v43 }
 0x37f   :  { %v1160_v16 = vadd.f32 %v3292_v56, %v1130_v61  ;;  %v1106_v23 = vmul.f32 %v2588_v60, %v3284_v43 }
 0x380   :  { %v1133_v31 = vmul.f32 %v1107_v12, %v3267_v30  ;;  %v3374_v30 = vld [vmem:[%s3789_s2 + $0x4] ss:$0 sm:$0xff]  ;;  %v1745_v12 = vld [vmem:[%s3793_s6 + $0x78] sm:$0xff] }
 0x381   :  { %2370 = vmatmul.mubr.f32.gmra.mxu0 %v1160_v16  ;;  %v1132_v47 = vmul.f32 %v1106_v23, %v3270_v51  ;;  %v1744_v16 = vld [vmem:[%s3793_s6 + $0x70] sm:$0xff]  ;;  %2449 = vmatprep.subr.mxu1 %v1745_v12  ;;  %v1743_v23 = vld [vmem:[%s3793_s6 + $0x68] sm:$0xff] }
 0x382   :  { %v2590_v50 = vpop.eup %2589  ;;  %2372 = vmatprep.mubr.f32.mxu0 %v1161_v62  ;;  %v1163_v9 = vadd.f32 %v3292_v56, %v1133_v31  ;;  %2378 = vmatprep.subr.mxu0 %v1745_v12  ;;  %v1742_v31 = vld [vmem:[%s3793_s6 + $0x60] sm:$0xff] }
 0x383   :  { %v1108_v46 = vmul.f32 %v2590_v50, %v3284_v43  ;;  %v1162_v20 = vadd.f32 %v3292_v56, %v1132_v47  ;;  %2465 = vmatpush3.msra.mxu1 %v1745_v12  ;;  %2379 = vmatpush3.msra.mxu0 %v1745_v12 }
 0x384   :  { %2450 = vmatprep.subr.mxu1 %v1744_v16  ;;  %2380 = vmatprep.subr.mxu0 %v1744_v16 }
 0x385   :  { %v1134_v21 = vmul.f32 %v1108_v46, %v3277_v28  ;;  %2373 = vmatmul.mubr.f32.gmra.mxu0 %v1162_v20  ;;  %2466 = vmatpush3.msra.mxu1 %v1744_v16 }
 0x386   :  { %2375 = vmatprep.mubr.f32.mxu0 %v1163_v9  ;;  %2381 = vmatpush3.msra.mxu0 %v1744_v16 }
 0x387   :  { %v1164_v24 = vadd.f32 %v3292_v56, %v1134_v21  ;;  %2451 = vmatprep.subr.mxu1 %v1743_v23  ;;  %2382 = vmatprep.subr.mxu0 %v1743_v23 }
 0x388   :  { %2467 = vmatpush3.msra.mxu1 %v1743_v23  ;;  %2383 = vmatpush3.msra.mxu0 %v1743_v23 }
 0x389   :  { %2376 = vmatmul.mubr.f32.gmra.mxu0 %v1164_v24  ;;  %2452 = vmatprep.subr.mxu1 %v1742_v31 }
 0x38a   :  { %2384 = vmatprep.subr.mxu0 %v1742_v31  ;;  %2468 = vmatpush3.msra.mxu1 %v1742_v31 }
 0x38b   :  { %2385 = vmatpush3.msra.mxu0 %v1742_v31 }
 0x415   :  { %v3369_v25 = vpop.f32.mrf.mxu0 }
 0x416   :  { %v3461_v26 = vadd.f32 %v3369_v25, %v3374_v30 }
 0x417   :  { %v1254_v51 = vpop.f32.mrf.mxu0 }
 0x418   :  { %v3377_v55 = vadd.f32 %v3374_v30, %v1254_v51 }
 0x41a   :  { %1383 = vadd.xlane.f32.xlu1 %v3377_v55 }
 0x41d   :  { %v3380_v43 = vpop.f32.mrf.mxu0 }
 0x41e   :  { %v3479_v60 = vadd.f32 %v3380_v43, %v3374_v30 }
 0x41f   :  { %v3382_v28 = vpop.f32.mrf.mxu0 }
 0x420   :  { %v3470_v10 = vadd.f32 %v3374_v30, %v3382_v28 }
 0x421   :  { %v2347_v29 = vpop.f32.mrf.mxu0 }
 0x422   :  { %v3385_v56 = vadd.f32 %v2347_v29, %v3374_v30 }
 0x423   :  { %v1274_v32 = vpop.f32.mrf.mxu0 }
 0x424   :  { %v3388_v2 = vadd.f32 %v3374_v30, %v1274_v32  ;;  %1393 = vadd.xlane.f32.xlu0 %v3385_v56 }
 0x425   :  { %v2350_v35 = vpop.f32.mrf.mxu0 }
 0x426   :  { %v3392_v34 = vadd.f32 %v2350_v35, %v3374_v30  ;;  %1391 = vadd.xlane.f32.xlu1 %v3388_v2 }
 0x427   :  { %v1284_v3 = vpop.f32.mrf.mxu0 }
 0x428   :  { %v3396_v14 = vadd.f32 %v3374_v30, %v1284_v3  ;;  %1397 = vadd.xlane.f32.xlu0 %v3392_v34 }
 0x429   :  { %v2353_v37 = vpop.f32.mrf.mxu0 }
 0x42a   :  { %v3400_v5 = vadd.f32 %v2353_v37, %v3374_v30  ;;  %1395 = vadd.xlane.f32.xlu1 %v3396_v14 }
 0x42b   :  { %v1294_v36 = vpop.f32.mrf.mxu0 }
 0x42c   :  { %v3404_v40 = vadd.f32 %v3374_v30, %v1294_v36  ;;  %1401 = vadd.xlane.f32.xlu0 %v3400_v5 }
 0x42d   :  { %v2356_v41 = vpop.f32.mrf.mxu0 }
 0x42e   :  { %v3408_v15 = vadd.f32 %v2356_v41, %v3374_v30  ;;  %1399 = vadd.xlane.f32.xlu1 %v3404_v40 }
 0x42f   :  { %v1304_v44 = vpop.f32.mrf.mxu0 }
 0x430   :  { %v3412_v57 = vadd.f32 %v3374_v30, %v1304_v44  ;;  %1405 = vadd.xlane.f32.xlu0 %v3408_v15 }
 0x431   :  { %v2359_v17 = vpop.f32.mrf.mxu0 }
 0x432   :  { %v3416_v45 = vadd.f32 %v2359_v17, %v3374_v30  ;;  %1403 = vadd.xlane.f32.xlu1 %v3412_v57 }
 0x433   :  { %v1314_v8 = vpop.f32.mrf.mxu0 }
 0x434   :  { %v3420_v7 = vadd.f32 %v3374_v30, %v1314_v8  ;;  %1409 = vadd.xlane.f32.xlu0 %v3416_v45  ;;  %v1741_v8 = vld [vmem:[%s3793_s6 + $0x58] sm:$0xff] }
 0x435   :  { %v2362_v39 = vpop.f32.mrf.mxu0  ;;  %2453 = vmatprep.subr.mxu1 %v1741_v8  ;;  %2386 = vmatprep.subr.mxu0 %v1741_v8 }
 0x436   :  { %v3424_v49 = vadd.f32 %v2362_v39, %v3374_v30  ;;  %1407 = vadd.xlane.f32.xlu1 %v3420_v7  ;;  %2469 = vmatpush3.msra.mxu1 %v1741_v8 }
 0x437   :  { %v1324_v52 = vpop.f32.mrf.mxu0  ;;  %2387 = vmatpush3.msra.mxu0 %v1741_v8 }
 0x438   :  { %v3428_v54 = vadd.f32 %v3374_v30, %v1324_v52  ;;  %1413 = vadd.xlane.f32.xlu0 %v3424_v49 }
 0x439   :  { %v2365_v58 = vpop.f32.mrf.mxu0 }
 0x43a   :  { %v3432_v59 = vadd.f32 %v2365_v58, %v3374_v30  ;;  %1411 = vadd.xlane.f32.xlu1 %v3428_v54 }
 0x43b   :  { %v1334_v48 = vpop.f32.mrf.mxu0 }
 0x43c   :  { %v3436_v11 = vadd.f32 %v3374_v30, %v1334_v48  ;;  %1417 = vadd.xlane.f32.xlu0 %v3432_v59  ;;  %v1739_v48 = vld [vmem:[%s3793_s6 + $0x48] sm:$0xff] }
 0x43d   :  { %v2368_v22 = vpop.f32.mrf.mxu0 }
 0x43e   :  { %v3440_v42 = vadd.f32 %v2368_v22, %v3374_v30  ;;  %1415 = vadd.xlane.f32.xlu1 %v3436_v11 }
 0x43f   :  { %v1344_v33 = vpop.f32.mrf.mxu0 }
 0x440   :  { %v3444_v19 = vadd.f32 %v3374_v30, %v1344_v33  ;;  %1421 = vadd.xlane.f32.xlu0 %v3440_v42 }
 0x441   :  { %v2371_v63 = vpop.f32.mrf.mxu0 }
 0x442   :  { %v3448_v13 = vadd.f32 %v2371_v63, %v3374_v30  ;;  %1419 = vadd.xlane.f32.xlu1 %v3444_v19 }
 0x443   :  { %v1354_v0 = vpop.f32.mrf.mxu0 }
 0x444   :  { %v3452_v1 = vadd.f32 %v3374_v30, %v1354_v0  ;;  %1425 = vadd.xlane.f32.xlu0 %v3448_v13 }
 0x445   :  { %v2374_v38 = vpop.f32.mrf.mxu0 }
 0x446   :  { %v3456_v27 = vadd.f32 %v2374_v38, %v3374_v30  ;;  %1423 = vadd.xlane.f32.xlu1 %v3452_v1 }
 0x447   :  { %v1364_v18 = vpop.f32.mrf.mxu0 }
 0x448   :  { %1429 = vadd.xlane.f32.xlu0 %v3456_v27  ;;  %v3465_v6 = vadd.f32 %v3374_v30, %v1364_v18 }
 0x449   :  { %v2377_v4 = vpop.f32.mrf.mxu0 }
 0x44a   :  { %1385 = vadd.xlane.f32.xlu1 %v3461_v26  ;;  %v3483_v62 = vadd.f32 %v2377_v4, %v3374_v30 }
 0x44b   :  { %v1374_v53 = vpop.f32.mrf.mxu0 }
 0x44c   :  { %1427 = vadd.xlane.f32.xlu0 %v3465_v6  ;;  %v3474_v61 = vadd.f32 %v3374_v30, %v1374_v53 }
 0x44e   :  { %1387 = vadd.xlane.f32.xlu1 %v3470_v10 }
 0x450   :  { %1431 = vadd.xlane.f32.xlu0 %v3474_v61 }
 0x452   :  { %1389 = vadd.xlane.f32.xlu1 %v3479_v60 }
 0x454   :  { %1433 = vadd.xlane.f32.xlu0 %v3483_v62 }
 0x4a3   :  { %v1384_v50 = vpop.xlane.xlu1 %1383 }
 0x4a4   :  { %v1435_v47 = vmul.f32 0.0078125, %v1384_v50 }
 0x4a6   :  { %v3500_v9 = vsub.f32 %v3377_v55, %v1435_v47 }
 0x4a8   :  { %v1487_v46 = vmul.f32 %v3500_v9, %v3500_v9 }
 0x4aa   :  { %1513 = vadd.xlane.f32.xlu1 %v1487_v46 }
 0x4ad   :  { %v1394_v20 = vpop.xlane.xlu0 %1393 }
 0x4ae   :  { %v1440_v21 = vmul.f32 0.0078125, %v1394_v20 }
 0x4af   :  { %v1392_v24 = vpop.xlane.xlu1 %1391 }
 0x4b0   :  { %v3505_v25 = vsub.f32 %v3385_v56, %v1440_v21  ;;  %v1439_v30 = vmul.f32 0.0078125, %v1392_v24 }
 0x4b1   :  { %v1398_v51 = vpop.xlane.xlu0 %1397 }
 0x4b2   :  { %v3508_v43 = vsub.f32 %v3388_v2, %v1439_v30  ;;  %v1442_v28 = vmul.f32 0.0078125, %v1398_v51  ;;  %v1492_v55 = vmul.f32 %v3505_v25, %v3505_v25  ;;  %v1738_v51 = vld [vmem:[%s3793_s6 + $0x40] sm:$0xff] }
 0x4b3   :  { %v1396_v29 = vpop.xlane.xlu1 %1395 }
 0x4b4   :  { %v3513_v32 = vsub.f32 %v3392_v34, %v1442_v28  ;;  %v1441_v35 = vmul.f32 0.0078125, %v1396_v29  ;;  %1523 = vadd.xlane.f32.xlu0 %v1492_v55  ;;  %v1491_v3 = vmul.f32 %v3508_v43, %v3508_v43  ;;  %v1737_v29 = vld [vmem:[%s3793_s6 + $0x38] sm:$0xff] }
 0x4b5   :  { %v1402_v56 = vpop.xlane.xlu0 %1401 }
 0x4b6   :  { %v3518_v37 = vsub.f32 %v3396_v14, %v1441_v35  ;;  %v1444_v36 = vmul.f32 0.0078125, %v1402_v56  ;;  %1521 = vadd.xlane.f32.xlu1 %v1491_v3  ;;  %v1494_v2 = vmul.f32 %v3513_v32, %v3513_v32  ;;  %v1740_v14 = vld [vmem:[%s3793_s6 + $0x50] sm:$0xff] }
 0x4b7   :  { %v1400_v41 = vpop.xlane.xlu1 %1399  ;;  %2454 = vmatprep.subr.mxu1 %v1740_v14  ;;  %2388 = vmatprep.subr.mxu0 %v1740_v14 }
 0x4b8   :  { %v3523_v44 = vsub.f32 %v3400_v5, %v1444_v36  ;;  %v1443_v34 = vmul.f32 0.0078125, %v1400_v41  ;;  %1527 = vadd.xlane.f32.xlu0 %v1494_v2  ;;  %v1493_v17 = vmul.f32 %v3518_v37, %v3518_v37  ;;  %2470 = vmatpush3.msra.mxu1 %v1740_v14  ;;  %v1736_v36 = vld [vmem:[%s3793_s6 + $0x30] sm:$0xff] }
 0x4b9   :  { %v1406_v39 = vpop.xlane.xlu0 %1405  ;;  %2455 = vmatprep.subr.mxu1 %v1739_v48  ;;  %2389 = vmatpush3.msra.mxu0 %v1740_v14 }
 0x4ba   :  { %v3534_v52 = vsub.f32 %v3404_v40, %v1443_v34  ;;  %v1446_v5 = vmul.f32 0.0078125, %v1406_v39  ;;  %1525 = vadd.xlane.f32.xlu1 %v1493_v17  ;;  %v1496_v58 = vmul.f32 %v3523_v44, %v3523_v44  ;;  %2471 = vmatpush3.msra.mxu1 %v1739_v48  ;;  %v1735_v17 = vld [vmem:[%s3793_s6 + $0x28] sm:$0xff] }
 0x4bb   :  { %v1404_v22 = vpop.xlane.xlu1 %1403  ;;  %2390 = vmatprep.subr.mxu0 %v1739_v48  ;;  %2456 = vmatprep.subr.mxu1 %v1738_v51 }
 0x4bc   :  { %v3542_v33 = vsub.f32 %v3408_v15, %v1446_v5  ;;  %v1445_v63 = vmul.f32 0.0078125, %v1404_v22  ;;  %1531 = vadd.xlane.f32.xlu0 %v1496_v58  ;;  %v1495_v40 = vmul.f32 %v3534_v52, %v3534_v52  ;;  %2391 = vmatpush3.msra.mxu0 %v1739_v48  ;;  %v1734_v5 = vld [vmem:[%s3793_s6 + $0x20] sm:$0xff] }
 0x4bd   :  { %v1410_v0 = vpop.xlane.xlu0 %1409  ;;  %2392 = vmatprep.subr.mxu0 %v1738_v51  ;;  %2472 = vmatpush3.msra.mxu1 %v1738_v51 }
 0x4be   :  { %v3547_v38 = vsub.f32 %v3412_v57, %v1445_v63  ;;  %v1448_v18 = vmul.f32 0.0078125, %v1410_v0  ;;  %1529 = vadd.xlane.f32.xlu1 %v1495_v40  ;;  %v1498_v4 = vmul.f32 %v3542_v33, %v3542_v33  ;;  %2457 = vmatprep.subr.mxu1 %v1737_v29  ;;  %v1733_v63 = vld [vmem:[%s3793_s6 + $0x18] sm:$0xff] }
 0x4bf   :  { %v1408_v15 = vpop.xlane.xlu1 %1407  ;;  %2393 = vmatpush3.msra.mxu0 %v1738_v51  ;;  %2473 = vmatpush3.msra.mxu1 %v1737_v29 }
 0x4c0   :  { %v3552_v53 = vsub.f32 %v3416_v45, %v1448_v18  ;;  %v1447_v12 = vmul.f32 0.0078125, %v1408_v15  ;;  %1535 = vadd.xlane.f32.xlu0 %v1498_v4  ;;  %v1497_v16 = vmul.f32 %v3547_v38, %v3547_v38  ;;  %2458 = vmatprep.subr.mxu1 %v1736_v36  ;;  %v1732_v4 = vld [vmem:[%s3793_s6 + $0x10] sm:$0xff] }
 0x4c1   :  { %v1414_v23 = vpop.xlane.xlu0 %1413  ;;  %2394 = vmatprep.subr.mxu0 %v1737_v29  ;;  %2474 = vmatpush3.msra.mxu1 %v1736_v36 }
 0x4c2   :  { %v3557_v57 = vsub.f32 %v3420_v7, %v1447_v12  ;;  %v1450_v31 = vmul.f32 0.0078125, %v1414_v23  ;;  %1533 = vadd.xlane.f32.xlu1 %v1497_v16  ;;  %v1500_v50 = vmul.f32 %v3552_v53, %v3552_v53  ;;  %2459 = vmatprep.subr.mxu1 %v1735_v17  ;;  %v1731_v23 = vld [vmem:[%s3793_s6 + $0x8] sm:$0xff] }
 0x4c3   :  { %v1412_v47 = vpop.xlane.xlu1 %1411  ;;  %2395 = vmatpush3.msra.mxu0 %v1737_v29  ;;  %2475 = vmatpush3.msra.mxu1 %v1735_v17 }
 0x4c4   :  { %v3562_v45 = vsub.f32 %v3424_v49, %v1450_v31  ;;  %v1449_v46 = vmul.f32 0.0078125, %v1412_v47  ;;  %1539 = vadd.xlane.f32.xlu0 %v1500_v50  ;;  %v1499_v20 = vmul.f32 %v3557_v57, %v3557_v57  ;;  %2460 = vmatprep.subr.mxu1 %v1734_v5 }
 0x4c5   :  { %v1418_v21 = vpop.xlane.xlu0 %1417  ;;  %2396 = vmatprep.subr.mxu0 %v1736_v36  ;;  %2476 = vmatpush3.msra.mxu1 %v1734_v5 }
 0x4c6   :  { %v3567_v24 = vsub.f32 %v3428_v54, %v1449_v46  ;;  %v1452_v7 = vmul.f32 0.0078125, %v1418_v21  ;;  %1537 = vadd.xlane.f32.xlu1 %v1499_v20  ;;  %v1502_v30 = vmul.f32 %v3562_v45, %v3562_v45  ;;  %2461 = vmatprep.subr.mxu1 %v1733_v63  ;;  %v1730_v46 = vld [vmem:[%s3793_s6] sm:$0xff] }
 0x4c7   :  { %v1416_v49 = vpop.xlane.xlu1 %1415  ;;  %2397 = vmatpush3.msra.mxu0 %v1736_v36  ;;  %2477 = vmatpush3.msra.mxu1 %v1733_v63 }
 0x4c8   :  { %v3575_v28 = vsub.f32 %v3432_v59, %v1452_v7  ;;  %v1451_v55 = vmul.f32 0.0078125, %v1416_v49  ;;  %1543 = vadd.xlane.f32.xlu0 %v1502_v30  ;;  %v1501_v54 = vmul.f32 %v3567_v24, %v3567_v24  ;;  %2462 = vmatprep.subr.mxu1 %v1732_v4 }
 0x4c9   :  { %v1422_v35 = vpop.xlane.xlu0 %1421  ;;  %2398 = vmatprep.subr.mxu0 %v1735_v17  ;;  %2478 = vmatpush3.msra.mxu1 %v1732_v4 }
 0x4ca   :  { %v3583_v3 = vsub.f32 %v3436_v11, %v1451_v55  ;;  %v1454_v56 = vmul.f32 0.0078125, %v1422_v35  ;;  %1541 = vadd.xlane.f32.xlu1 %v1501_v54  ;;  %v1504_v59 = vmul.f32 %v3575_v28, %v3575_v28  ;;  %2463 = vmatprep.subr.mxu1 %v1731_v23 }
 0x4cb   :  { %v1420_v2 = vpop.xlane.xlu1 %1419  ;;  %2399 = vmatpush3.msra.mxu0 %v1735_v17  ;;  %2479 = vmatpush3.msra.mxu1 %v1731_v23 }
 0x4cc   :  { %v3591_v41 = vsub.f32 %v3440_v42, %v1454_v56  ;;  %v1453_v34 = vmul.f32 0.0078125, %v1420_v2  ;;  %1547 = vadd.xlane.f32.xlu0 %v1504_v59  ;;  %v1503_v11 = vmul.f32 %v3583_v3, %v3583_v3  ;;  %2464 = vmatprep.subr.mxu1 %v1730_v46 }
 0x4cd   :  { %v1426_v8 = vpop.xlane.xlu0 %1425  ;;  %2400 = vmatprep.subr.mxu0 %v1734_v5  ;;  %2480 = vmatpush3.msra.mxu1 %v1730_v46 }
 0x4ce   :  { %v3599_v14 = vsub.f32 %v3444_v19, %v1453_v34  ;;  %v1456_v39 = vmul.f32 0.0078125, %v1426_v8  ;;  %1545 = vadd.xlane.f32.xlu1 %v1503_v11  ;;  %v1506_v42 = vmul.f32 %v3591_v41, %v3591_v41  ;;  %2401 = vmatpush3.msra.mxu0 %v1734_v5 }
 0x4cf   :  { %v1424_v58 = vpop.xlane.xlu1 %1423  ;;  %2402 = vmatprep.subr.mxu0 %v1733_v63 }
 0x4d0   :  { %v3607_v48 = vsub.f32 %v3448_v13, %v1456_v39  ;;  %v1455_v22 = vmul.f32 0.0078125, %v1424_v58  ;;  %1551 = vadd.xlane.f32.xlu0 %v1506_v42  ;;  %v1505_v19 = vmul.f32 %v3599_v14, %v3599_v14  ;;  %2403 = vmatpush3.msra.mxu0 %v1733_v63  ;;  %v3668_v63 = vld [vmem:[%s3789_s2 + $0x5] ss:$0 sm:$0xff] }
 0x4d1   :  { %v1430_v40 = vpop.xlane.xlu0 %1429  ;;  %2404 = vmatprep.subr.mxu0 %v1732_v4 }
 0x4d2   :  { %v3615_v0 = vsub.f32 %v3452_v1, %v1455_v22  ;;  %v1458_v18 = vmul.f32 0.0078125, %v1430_v40  ;;  %1549 = vadd.xlane.f32.xlu1 %v1505_v19  ;;  %v1508_v13 = vmul.f32 %v3607_v48, %v3607_v48  ;;  %2405 = vmatpush3.msra.mxu0 %v1732_v4 }
 0x4d3   :  { %v1386_v15 = vpop.xlane.xlu1 %1385  ;;  %2406 = vmatprep.subr.mxu0 %v1731_v23 }
 0x4d4   :  { %v3623_v12 = vsub.f32 %v3456_v27, %v1458_v18  ;;  %v1436_v16 = vmul.f32 0.0078125, %v1386_v15  ;;  %1555 = vadd.xlane.f32.xlu0 %v1508_v13  ;;  %v1507_v1 = vmul.f32 %v3615_v0, %v3615_v0  ;;  %2407 = vmatpush3.msra.mxu0 %v1731_v23 }
 0x4d5   :  { %v1428_v31 = vpop.xlane.xlu0 %1427  ;;  %2408 = vmatprep.subr.mxu0 %v1730_v46 }
 0x4d6   :  { %v3631_v50 = vsub.f32 %v3461_v26, %v1436_v16  ;;  %v1457_v47 = vmul.f32 0.0078125, %v1428_v31  ;;  %1553 = vadd.xlane.f32.xlu1 %v1507_v1  ;;  %v1510_v27 = vmul.f32 %v3623_v12, %v3623_v12  ;;  %2409 = vmatpush3.msra.mxu0 %v1730_v46 }
 0x4d7   :  { %v1388_v20 = vpop.xlane.xlu1 %1387 }
 0x4d8   :  { %v3639_v21 = vsub.f32 %v3465_v6, %v1457_v47  ;;  %v1437_v7 = vmul.f32 0.0078125, %v1388_v20  ;;  %1559 = vadd.xlane.f32.xlu0 %v1510_v27  ;;  %v1488_v26 = vmul.f32 %v3631_v50, %v3631_v50  ;;  %v3674_v47 = vld [vmem:[%s3789_s2 + $0x6] ss:$0 sm:$0xff] }
 0x4d9   :  { %v1432_v30 = vpop.xlane.xlu0 %1431 }
 0x4da   :  { %v3644_v51 = vsub.f32 %v3470_v10, %v1437_v7  ;;  %v1459_v49 = vmul.f32 0.0078125, %v1432_v30  ;;  %1515 = vadd.xlane.f32.xlu1 %v1488_v26  ;;  %v1509_v55 = vmul.f32 %v3639_v21, %v3639_v21 }
 0x4db   :  { %v1390_v54 = vpop.xlane.xlu1 %1389 }
 0x4dc   :  { %v3649_v6 = vsub.f32 %v3474_v61, %v1459_v49  ;;  %v1438_v29 = vmul.f32 0.0078125, %v1390_v54  ;;  %1557 = vadd.xlane.f32.xlu0 %v1509_v55  ;;  %v1489_v35 = vmul.f32 %v3644_v51, %v3644_v51 }
 0x4dd   :  { %v1434_v56 = vpop.xlane.xlu0 %1433 }
 0x4de   :  { %v3654_v10 = vsub.f32 %v3479_v60, %v1438_v29  ;;  %v1460_v59 = vmul.f32 0.0078125, %v1434_v56  ;;  %1517 = vadd.xlane.f32.xlu1 %v1489_v35  ;;  %v1511_v36 = vmul.f32 %v3649_v6, %v3649_v6 }
 0x4e0   :  { %v3659_v61 = vsub.f32 %v3483_v62, %v1460_v59  ;;  %1561 = vadd.xlane.f32.xlu0 %v1511_v36  ;;  %v1490_v2 = vmul.f32 %v3654_v10, %v3654_v10 }
 0x4e2   :  { %1519 = vadd.xlane.f32.xlu1 %v1490_v2  ;;  %v1512_v60 = vmul.f32 %v3659_v61, %v3659_v61 }
 0x4e4   :  { %1563 = vadd.xlane.f32.xlu0 %v1512_v60 }
 0x533   :  { %v1514_v34 = vpop.xlane.xlu1 %1513 }
 0x534   :  { %v1565_v11 = vmul.f32 0.0078125, %v1514_v34 }
 0x536   :  { %v1591_v17 = vadd.f32 1e-05, %v1565_v11 }
 0x538   :  { %2591 = vrsqrt.f32 %v1591_v17 }
 0x53d   :  { %v1524_v8 = vpop.xlane.xlu0 %1523 }
 0x53e   :  { %v1570_v39 = vmul.f32 0.0078125, %v1524_v8 }
 0x53f   :  { %v1522_v42 = vpop.xlane.xlu1 %1521 }
 0x540   :  { %v1596_v62 = vadd.f32 1e-05, %v1570_v39  ;;  %v1569_v5 = vmul.f32 0.0078125, %v1522_v42 }
 0x541   :  { %v1528_v58 = vpop.xlane.xlu0 %1527 }
 0x542   :  { %2593 = vrsqrt.f32 %v1596_v62  ;;  %v1595_v22 = vadd.f32 1e-05, %v1569_v5  ;;  %v1572_v19 = vmul.f32 0.0078125, %v1528_v58 }
 0x543   :  { %v1526_v40 = vpop.xlane.xlu1 %1525 }
 0x544   :  { %2595 = vrsqrt.f32 %v1595_v22  ;;  %v1598_v18 = vadd.f32 1e-05, %v1572_v19  ;;  %v1571_v13 = vmul.f32 0.0078125, %v1526_v40 }
 0x545   :  { %v2592_v4 = vpop.eup %2591  ;;  %v1532_v15 = vpop.xlane.xlu0 %1531 }
 0x546   :  { %2597 = vrsqrt.f32 %v1598_v18  ;;  %v1597_v16 = vadd.f32 1e-05, %v1571_v13  ;;  %v1574_v1 = vmul.f32 0.0078125, %v1532_v15  ;;  %v1647_v23 = vmul.f32 %v2592_v4, %v3668_v63 }
 0x547   :  { %v1530_v31 = vpop.xlane.xlu1 %1529 }
 0x548   :  { %2599 = vrsqrt.f32 %v1597_v16  ;;  %v1600_v27 = vadd.f32 1e-05, %v1574_v1  ;;  %v1573_v46 = vmul.f32 0.0078125, %v1530_v31  ;;  %v1673_v20 = vmul.f32 %v1647_v23, %v3500_v9 }
 0x549   :  { %v1536_v7 = vpop.xlane.xlu0 %1535 }
 0x54a   :  { %2601 = vrsqrt.f32 %v1600_v27  ;;  %v1599_v26 = vadd.f32 1e-05, %v1573_v46  ;;  %v1576_v30 = vmul.f32 0.0078125, %v1536_v7  ;;  %v1703_v49 = vadd.f32 %v3674_v47, %v1673_v20 }
 0x54b   :  { %v1534_v55 = vpop.xlane.xlu1 %1533 }
 0x54c   :  { %2603 = vrsqrt.f32 %v1599_v26  ;;  %v1602_v54 = vadd.f32 1e-05, %v1576_v30  ;;  %v1575_v29 = vmul.f32 0.0078125, %v1534_v55  ;;  %2410 = vmatprep.mubr.f32.mxu0 %v1703_v49 }
 0x54d   :  { %v1540_v35 = vpop.xlane.xlu0 %1539 }
 0x54e   :  { %2605 = vrsqrt.f32 %v1602_v54  ;;  %v1601_v56 = vadd.f32 1e-05, %v1575_v29  ;;  %v1578_v59 = vmul.f32 0.0078125, %v1540_v35 }
 0x54f   :  { %v2594_v36 = vpop.eup %2593  ;;  %v1538_v2 = vpop.xlane.xlu1 %1537 }
 0x550   :  { %v1652_v60 = vmul.f32 %v2594_v36, %v3668_v63  ;;  %2607 = vrsqrt.f32 %v1601_v56  ;;  %v1604_v9 = vadd.f32 1e-05, %v1578_v59  ;;  %v1577_v34 = vmul.f32 0.0078125, %v1538_v2 }
 0x551   :  { %v2596_v11 = vpop.eup %2595  ;;  %v1544_v17 = vpop.xlane.xlu0 %1543 }
 0x552   :  { %2609 = vrsqrt.f32 %v1604_v9  ;;  %v1603_v8 = vadd.f32 1e-05, %v1577_v34  ;;  %v1580_v39 = vmul.f32 0.0078125, %v1544_v17  ;;  %v1651_v42 = vmul.f32 %v2596_v11, %v3668_v63 }
 0x553   :  { %v2598_v62 = vpop.eup %2597  ;;  %v1542_v5 = vpop.xlane.xlu1 %1541  ;;  %v1678_v58 = vmul.f32 %v1652_v60, %v3505_v25 }
 0x554   :  { %2611 = vrsqrt.f32 %v1603_v8  ;;  %v1606_v22 = vadd.f32 1e-05, %v1580_v39  ;;  %v1579_v19 = vmul.f32 0.0078125, %v1542_v5  ;;  %v1677_v40 = vmul.f32 %v1651_v42, %v3508_v43 }
 0x555   :  { %v2600_v18 = vpop.eup %2599  ;;  %v1548_v13 = vpop.xlane.xlu0 %1547  ;;  %v1654_v4 = vmul.f32 %v2598_v62, %v3668_v63  ;;  %v1708_v27 = vadd.f32 %v3674_v47, %v1678_v58 }
 0x556   :  { %2613 = vrsqrt.f32 %v1606_v22  ;;  %v1605_v15 = vadd.f32 1e-05, %v1579_v19  ;;  %v1582_v16 = vmul.f32 0.0078125, %v1548_v13  ;;  %v1707_v1 = vadd.f32 %v3674_v47, %v1677_v40 }
 0x557   :  { %v2602_v23 = vpop.eup %2601  ;;  %v1546_v31 = vpop.xlane.xlu1 %1545  ;;  %v1653_v25 = vmul.f32 %v2600_v18, %v3668_v63  ;;  %v1680_v46 = vmul.f32 %v1654_v4, %v3513_v32 }
 0x558   :  { %2615 = vrsqrt.f32 %v1605_v15  ;;  %v1608_v20 = vadd.f32 1e-05, %v1582_v16  ;;  %v1581_v43 = vmul.f32 0.0078125, %v1546_v31  ;;  %2416 = vmatprep.mubr.f32.mxu1 %v1707_v1  ;;  %v1656_v7 = vmul.f32 %v2602_v23, %v3668_v63 }
 0x559   :  { %v2604_v26 = vpop.eup %2603  ;;  %2417 = vmatmul.mubr.f32.vlgmr.msra.gmra.mxu1 %v1708_v27  ;;  %v1552_v30 = vpop.xlane.xlu0 %1551  ;;  %v1679_v49 = vmul.f32 %v1653_v25, %v3518_v37  ;;  %v1710_v59 = vadd.f32 %v3674_v47, %v1680_v46 }
 0x55a   :  { %2617 = vrsqrt.f32 %v1608_v20  ;;  %v1607_v55 = vadd.f32 1e-05, %v1581_v43  ;;  %v1584_v54 = vmul.f32 0.0078125, %v1552_v30  ;;  %v1655_v29 = vmul.f32 %v2604_v26, %v3668_v63 }
 0x55b   :  { %v2606_v35 = vpop.eup %2605  ;;  %v1550_v56 = vpop.xlane.xlu1 %1549  ;;  %v1709_v32 = vadd.f32 %v3674_v47, %v1679_v49  ;;  %v1682_v36 = vmul.f32 %v1656_v7, %v3523_v44 }
 0x55c   :  { %2619 = vrsqrt.f32 %v1607_v55  ;;  %v1610_v2 = vadd.f32 1e-05, %v1584_v54  ;;  %v1583_v60 = vmul.f32 0.0078125, %v1550_v56  ;;  %v1681_v9 = vmul.f32 %v1655_v29, %v3534_v52 }
 0x55d   :  { %v2608_v34 = vpop.eup %2607  ;;  %2419 = vmatprep.mubr.f32.mxu1 %v1709_v32  ;;  %v1556_v37 = vpop.xlane.xlu0 %1555  ;;  %v1658_v11 = vmul.f32 %v2606_v35, %v3668_v63  ;;  %v1712_v44 = vadd.f32 %v3674_v47, %v1682_v36 }
 0x55e   :  { %2621 = vrsqrt.f32 %v1610_v2  ;;  %v1609_v17 = vadd.f32 1e-05, %v1583_v60  ;;  %2420 = vmatmul.mubr.f32.gmra.mxu1 %v1710_v59  ;;  %v1586_v8 = vmul.f32 0.0078125, %v1556_v37  ;;  %v1711_v39 = vadd.f32 %v3674_v47, %v1681_v9 }
 0x55f   :  { %v2610_v42 = vpop.eup %2609  ;;  %v1554_v62 = vpop.xlane.xlu1 %1553  ;;  %v1657_v5 = vmul.f32 %v2608_v34, %v3668_v63  ;;  %v1684_v58 = vmul.f32 %v1658_v11, %v3542_v33 }
 0x560   :  { %2623 = vrsqrt.f32 %v1609_v17  ;;  %v1612_v52 = vadd.f32 1e-05, %v1586_v8  ;;  %v1585_v22 = vmul.f32 0.0078125, %v1554_v62  ;;  %2422 = vmatprep.mubr.f32.mxu1 %v1711_v39  ;;  %v1660_v19 = vmul.f32 %v2610_v42, %v3668_v63 }
 0x561   :  { %v2612_v40 = vpop.eup %2611  ;;  %v1560_v18 = vpop.xlane.xlu0 %1559  ;;  %v1683_v13 = vmul.f32 %v1657_v5, %v3547_v38  ;;  %v1714_v31 = vadd.f32 %v3674_v47, %v1684_v58 }
 0x562   :  { %2625 = vrsqrt.f32 %v1612_v52  ;;  %v1611_v4 = vadd.f32 1e-05, %v1585_v22  ;;  %2423 = vmatmul.mubr.f32.gmra.mxu1 %v1712_v44  ;;  %v1588_v15 = vmul.f32 0.0078125, %v1560_v18  ;;  %v1659_v16 = vmul.f32 %v2612_v40, %v3668_v63 }
 0x563   :  { %v2614_v1 = vpop.eup %2613  ;;  %v1516_v23 = vpop.xlane.xlu1 %1515  ;;  %v1713_v33 = vadd.f32 %v3674_v47, %v1683_v13  ;;  %v1686_v27 = vmul.f32 %v1660_v19, %v3552_v53 }
 0x564   :  { %2627 = vrsqrt.f32 %v1611_v4  ;;  %v1614_v25 = vadd.f32 1e-05, %v1588_v15  ;;  %v1566_v46 = vmul.f32 0.0078125, %v1516_v23  ;;  %v1685_v20 = vmul.f32 %v1659_v16, %v3557_v57 }
 0x565   :  { %v2616_v38 = vpop.eup %2615  ;;  %2425 = vmatprep.mubr.f32.mxu1 %v1713_v33  ;;  %v1558_v43 = vpop.xlane.xlu0 %1557  ;;  %v1662_v7 = vmul.f32 %v2614_v1, %v3668_v63  ;;  %v1716_v53 = vadd.f32 %v3674_v47, %v1686_v27 }
 0x566   :  { %2629 = vrsqrt.f32 %v1614_v25  ;;  %v1592_v26 = vadd.f32 1e-05, %v1566_v46  ;;  %2426 = vmatmul.mubr.f32.gmra.mxu1 %v1714_v31  ;;  %v1587_v30 = vmul.f32 0.0078125, %v1558_v43  ;;  %v1715_v49 = vadd.f32 %v3674_v47, %v1685_v20 }
 0x567   :  { %v2618_v55 = vpop.eup %2617  ;;  %v1518_v54 = vpop.xlane.xlu1 %1517  ;;  %v1661_v29 = vmul.f32 %v2616_v38, %v3668_v63  ;;  %v1688_v35 = vmul.f32 %v1662_v7, %v3562_v45 }
 0x568   :  { %2631 = vrsqrt.f32 %v1592_v26  ;;  %v1613_v57 = vadd.f32 1e-05, %v1587_v30  ;;  %v1567_v56 = vmul.f32 0.0078125, %v1518_v54  ;;  %2428 = vmatprep.mubr.f32.mxu1 %v1715_v49  ;;  %v1664_v32 = vmul.f32 %v2618_v55, %v3668_v63 }
 0x569   :  { %v2620_v59 = vpop.eup %2619  ;;  %v1562_v36 = vpop.xlane.xlu0 %1561  ;;  %v1687_v2 = vmul.f32 %v1661_v29, %v3567_v24  ;;  %v1718_v17 = vadd.f32 %v3674_v47, %v1688_v35 }
 0x56a   :  { %2633 = vrsqrt.f32 %v1613_v57  ;;  %v1593_v60 = vadd.f32 1e-05, %v1567_v56  ;;  %2429 = vmatmul.mubr.f32.gmra.mxu1 %v1716_v53  ;;  %v1589_v9 = vmul.f32 0.0078125, %v1562_v36  ;;  %v1663_v34 = vmul.f32 %v2620_v59, %v3668_v63 }
 0x56b   :  { %v2622_v37 = vpop.eup %2621  ;;  %v1520_v11 = vpop.xlane.xlu1 %1519  ;;  %v1717_v45 = vadd.f32 %v3674_v47, %v1687_v2  ;;  %v1690_v8 = vmul.f32 %v1664_v32, %v3575_v28 }
 0x56c   :  { %2635 = vrsqrt.f32 %v1593_v60  ;;  %v1615_v39 = vadd.f32 1e-05, %v1589_v9  ;;  %v1568_v42 = vmul.f32 0.0078125, %v1520_v11  ;;  %v1689_v62 = vmul.f32 %v1663_v34, %v3583_v3 }
 0x56d   :  { %v2624_v24 = vpop.eup %2623  ;;  %2431 = vmatprep.mubr.f32.mxu1 %v1717_v45  ;;  %v1564_v44 = vpop.xlane.xlu0 %1563  ;;  %v1666_v5 = vmul.f32 %v2622_v37, %v3668_v63  ;;  %v1720_v40 = vadd.f32 %v3674_v47, %v1690_v8 }
 0x56e   :  { %2637 = vrsqrt.f32 %v1615_v39  ;;  %v1594_v58 = vadd.f32 1e-05, %v1568_v42  ;;  %2432 = vmatmul.mubr.f32.gmra.mxu1 %v1718_v17  ;;  %v1590_v52 = vmul.f32 0.0078125, %v1564_v44  ;;  %v1719_v22 = vadd.f32 %v3674_v47, %v1689_v62 }
 0x56f   :  { %v2626_v19 = vpop.eup %2625  ;;  %v1665_v28 = vmul.f32 %v2624_v24, %v3668_v63  ;;  %v1692_v3 = vmul.f32 %v1666_v5, %v3591_v41 }
 0x570   :  { %2639 = vrsqrt.f32 %v1594_v58  ;;  %v1616_v18 = vadd.f32 1e-05, %v1590_v52  ;;  %2434 = vmatprep.mubr.f32.mxu1 %v1719_v22  ;;  %v1668_v13 = vmul.f32 %v2626_v19, %v3668_v63 }
 0x571   :  { %v2628_v4 = vpop.eup %2627  ;;  %v1691_v15 = vmul.f32 %v1665_v28, %v3599_v14  ;;  %v1722_v33 = vadd.f32 %v3674_v47, %v1692_v3 }
 0x572   :  { %2641 = vrsqrt.f32 %v1616_v18  ;;  %2435 = vmatmul.mubr.f32.gmra.mxu1 %v1720_v40  ;;  %v1667_v16 = vmul.f32 %v2628_v4, %v3668_v63  ;;  %v1694_v27 = vmul.f32 %v1668_v13, %v3607_v48 }
 0x573   :  { %v2630_v1 = vpop.eup %2629  ;;  %v1721_v23 = vadd.f32 %v3674_v47, %v1691_v15 }
 0x574   :  { %v1693_v31 = vmul.f32 %v1667_v16, %v3615_v0  ;;  %v1670_v41 = vmul.f32 %v2630_v1, %v3668_v63  ;;  %v1724_v38 = vadd.f32 %v3674_v47, %v1694_v27 }
 0x575   :  { %v2632_v25 = vpop.eup %2631  ;;  %2437 = vmatprep.mubr.f32.mxu1 %v1721_v23 }
 0x576   :  { %v1648_v46 = vmul.f32 %v2632_v25, %v3668_v63  ;;  %2438 = vmatmul.mubr.f32.gmra.mxu1 %v1722_v33  ;;  %v1723_v14 = vadd.f32 %v3674_v47, %v1693_v31  ;;  %v1696_v48 = vmul.f32 %v1670_v41, %v3623_v12 }
 0x577   :  { %v2634_v20 = vpop.eup %2633 }
 0x578   :  { %2440 = vmatprep.mubr.f32.mxu1 %v1723_v14  ;;  %v1674_v43 = vmul.f32 %v1648_v46, %v3631_v50  ;;  %v1669_v7 = vmul.f32 %v2634_v20, %v3668_v63  ;;  %v1726_v35 = vadd.f32 %v3674_v47, %v1696_v48 }
 0x579   :  { %v2636_v0 = vpop.eup %2635 }
 0x57a   :  { %2441 = vmatmul.mubr.f32.gmra.mxu1 %v1724_v38  ;;  %v1704_v26 = vadd.f32 %v3674_v47, %v1674_v43  ;;  %v1695_v30 = vmul.f32 %v1669_v7, %v3639_v21  ;;  %v1649_v49 = vmul.f32 %v2636_v0, %v3668_v63 }
 0x57b   :  { %v2638_v55 = vpop.eup %2637 }
 0x57c   :  { %2411 = vmatmul.mubr.f32.vlgmr.msra.gmra.mxu0 %v1704_v26  ;;  %v1725_v54 = vadd.f32 %v3674_v47, %v1695_v30  ;;  %v1675_v53 = vmul.f32 %v1649_v49, %v3644_v51  ;;  %v1671_v50 = vmul.f32 %v2638_v55, %v3668_v63 }
 0x57d   :  { %v2640_v29 = vpop.eup %2639 }
 0x57e   :  { %2443 = vmatprep.mubr.f32.mxu1 %v1725_v54  ;;  %v1705_v12 = vadd.f32 %v3674_v47, %v1675_v53  ;;  %v1697_v57 = vmul.f32 %v1671_v50, %v3649_v6  ;;  %v1650_v21 = vmul.f32 %v2640_v29, %v3668_v63  ;;  %v3756_v6 = vld [vmem:[%s3789_s2 + $0x7] ss:$0 sm:$0xff]  ;;  %s2666_s2 = smov [#allocation2]  }
 0x57f   :  { %v2642_v56 = vpop.eup %2641  ;;  %2444 = vmatmul.mubr.f32.gmra.mxu1 %v1726_v35  ;;  %s1976_s0 = sshll.u32 %s2666_s2, 4  ;;  %s1977_s0 = int_to_ptr.vmem [resolvable:$true] %s1976_s0 }
 0x580   :  { %2413 = vmatprep.mubr.f32.mxu0 %v1705_v12  ;;  %v1727_v32 = vadd.f32 %v3674_v47, %v1697_v57  ;;  %v1676_v59 = vmul.f32 %v1650_v21, %v3654_v10  ;;  %v1672_v51 = vmul.f32 %v2642_v56, %v3668_v63  ;;  %s2643_s3 = scalar_lea.vmem %s1977_s0, 3328  ;;  %p2648_p1 = scmp.lt.s32.totalorder %s1977_s0, %s1977_s0 }
 0x581   :  { %p2644_p0 = scmp.ne.s32.totalorder %s1977_s0, %s2643_s3  ;;  %p2649_p2 = scmp.lt.s32.totalorder %s2643_s3, %s2643_s3 }
 0x582   :  { %2446 = vmatprep.mubr.f32.mxu1 %v1727_v32  ;;  %v1706_v36 = vadd.f32 %v3674_v47, %v1676_v59  ;;  %v1698_v2 = vmul.f32 %v1672_v51, %v3659_v61 }
 0x583   :  { %p2650_p3 = por %p2649_p2, %p2648_p1 }
 0x584   :  { %2414 = vmatmul.mubr.f32.gmra.mxu0 %v1706_v36  ;;  %v1728_v60 = vadd.f32 %v3674_v47, %v1698_v2 }
 0x585   :  { %p2651_p4 = pnand %p2650_p3, %p2644_p0 }
 0x586   :  { %2447 = vmatmul.mubr.f32.gmra.mxu1 %v1728_v60 }
 0x619   :  { %v2418_v9 = vpop.f32.mrf.mxu1 }
 0x61a   :  { %v1842_v34 = vadd.f32 %v2418_v9, %v3756_v6 }
 0x61b   :  { %v1836_v10 = vpop.f32.mrf.mxu1 }
 0x61c   :  { %1950 = vst [vmem:[#allocation2 + $0x28] sm:$0xff] %v1842_v34  ;;  %v1837_v63 = vadd.f32 %v3756_v6, %v1836_v10 }
 0x61e   :  { %1949 = vst [vmem:[#allocation2 + $0x20] sm:$0xff] %v1837_v63  ;;  %v2421_v37 = vpop.f32.mrf.mxu1 }
 0x61f   :  { %v1852_v61 = vadd.f32 %v2421_v37, %v3756_v6 }
 0x620   :  { %v1846_v11 = vpop.f32.mrf.mxu1 }
 0x621   :  { %1952 = vst [vmem:[#allocation2 + $0x38] sm:$0xff] %v1852_v61  ;;  %v1847_v47 = vadd.f32 %v3756_v6, %v1846_v11 }
 0x622   :  { %v2424_v45 = vpop.f32.mrf.mxu1 }
 0x623   :  { %1951 = vst [vmem:[#allocation2 + $0x30] sm:$0xff] %v1847_v47  ;;  %v1862_v17 = vadd.f32 %v2424_v45, %v3756_v6 }
 0x624   :  { %v1856_v8 = vpop.f32.mrf.mxu1 }
 0x625   :  { %1954 = vst [vmem:[#allocation2 + $0x48] sm:$0xff] %v1862_v17  ;;  %v1857_v39 = vadd.f32 %v3756_v6, %v1856_v8 }
 0x626   :  { %v2427_v42 = vpop.f32.mrf.mxu1 }
 0x627   :  { %1953 = vst [vmem:[#allocation2 + $0x40] sm:$0xff] %v1857_v39  ;;  %v1872_v62 = vadd.f32 %v2427_v42, %v3756_v6 }
 0x628   :  { %v1866_v24 = vpop.f32.mrf.mxu1 }
 0x629   :  { %1956 = vst [vmem:[#allocation2 + $0x58] sm:$0xff] %v1872_v62  ;;  %v1867_v44 = vadd.f32 %v3756_v6, %v1866_v24 }
 0x62a   :  { %v2430_v5 = vpop.f32.mrf.mxu1 }
 0x62b   :  { %1955 = vst [vmem:[#allocation2 + $0x50] sm:$0xff] %v1867_v44  ;;  %v1882_v58 = vadd.f32 %v2430_v5, %v3756_v6 }
 0x62c   :  { %v1876_v52 = vpop.f32.mrf.mxu1 }
 0x62d   :  { %1958 = vst [vmem:[#allocation2 + $0x68] sm:$0xff] %v1882_v58  ;;  %v1877_v22 = vadd.f32 %v3756_v6, %v1876_v52 }
 0x62e   :  { %v2433_v19 = vpop.f32.mrf.mxu1 }
 0x62f   :  { %1957 = vst [vmem:[#allocation2 + $0x60] sm:$0xff] %v1877_v22  ;;  %v1892_v40 = vadd.f32 %v2433_v19, %v3756_v6 }
 0x630   :  { %v1886_v28 = vpop.f32.mrf.mxu1 }
 0x631   :  { %1960 = vst [vmem:[#allocation2 + $0x78] sm:$0xff] %v1892_v40  ;;  %v1887_v18 = vadd.f32 %v3756_v6, %v1886_v28 }
 0x632   :  { %v2436_v3 = vpop.f32.mrf.mxu1 }
 0x633   :  { %1959 = vst [vmem:[#allocation2 + $0x70] sm:$0xff] %v1887_v18  ;;  %v1902_v13 = vadd.f32 %v2436_v3, %v3756_v6 }
 0x634   :  { %v1896_v4 = vpop.f32.mrf.mxu1 }
 0x635   :  { %1962 = vst [vmem:[#allocation2 + $0x88] sm:$0xff] %v1902_v13  ;;  %v1897_v15 = vadd.f32 %v3756_v6, %v1896_v4 }
 0x636   :  { %v2439_v16 = vpop.f32.mrf.mxu1 }
 0x637   :  { %1961 = vst [vmem:[#allocation2 + $0x80] sm:$0xff] %v1897_v15  ;;  %v1912_v1 = vadd.f32 %v2439_v16, %v3756_v6 }
 0x638   :  { %v1906_v23 = vpop.f32.mrf.mxu1 }
 0x639   :  { %1964 = vst [vmem:[#allocation2 + $0x98] sm:$0xff] %v1912_v1  ;;  %v1907_v33 = vadd.f32 %v3756_v6, %v1906_v23 }
 0x63a   :  { %v2442_v31 = vpop.f32.mrf.mxu1 }
 0x63b   :  { %1963 = vst [vmem:[#allocation2 + $0x90] sm:$0xff] %v1907_v33  ;;  %v1922_v27 = vadd.f32 %v2442_v31, %v3756_v6 }
 0x63c   :  { %v1916_v25 = vpop.f32.mrf.mxu1  ;;  %v2412_v41 = vpop.f32.mrf.mxu0 }
 0x63d   :  { %1966 = vst [vmem:[#allocation2 + $0xa8] sm:$0xff] %v1922_v27  ;;  %v1917_v46 = vadd.f32 %v3756_v6, %v1916_v25  ;;  %v1822_v14 = vadd.f32 %v2412_v41, %v3756_v6 }
 0x63e   :  { %v1816_v20 = vpop.f32.mrf.mxu0 }
 0x63f   :  { %1965 = vst [vmem:[#allocation2 + $0xa0] sm:$0xff] %v1917_v46  ;;  %1946 = vst [vmem:[#allocation2 + $0x8] sm:$0xff] %v1822_v14  ;;  %v1817_v38 = vadd.f32 %v3756_v6, %v1816_v20  ;;  %v2445_v43 = vpop.f32.mrf.mxu1 }
 0x640   :  { %v1932_v7 = vadd.f32 %v2445_v43, %v3756_v6 }
 0x641   :  { %1945 = vst [vmem:[#allocation2] sm:$0xff] %v1817_v38  ;;  %v1926_v0 = vpop.f32.mrf.mxu1 }
 0x642   :  { %1968 = vst [vmem:[#allocation2 + $0xb8] sm:$0xff] %v1932_v7  ;;  %v1927_v48 = vadd.f32 %v3756_v6, %v1926_v0 }
 0x644   :  { %1967 = vst [vmem:[#allocation2 + $0xb0] sm:$0xff] %v1927_v48  ;;  %v2415_v26 = vpop.f32.mrf.mxu0 }
 0x645   :  { %v1832_v30 = vadd.f32 %v2415_v26, %v3756_v6 }
 0x646   :  { %v1826_v49 = vpop.f32.mrf.mxu0  ;;  %v2448_v55 = vpop.f32.mrf.mxu1 }
 0x647   :  { %1948 = vst [vmem:[#allocation2 + $0x18] sm:$0xff] %v1832_v30  ;;  %v1827_v54 = vadd.f32 %v3756_v6, %v1826_v49  ;;  %v1942_v53 = vadd.f32 %v2448_v55, %v3756_v6 }
 0x648   :  { %v1936_v50 = vpop.f32.mrf.mxu1 }
 0x649   :  { %1947 = vst [vmem:[#allocation2 + $0x10] sm:$0xff] %v1827_v54  ;;  %1970 = vst [vmem:[#allocation2 + $0xc8] sm:$0xff] %v1942_v53  ;;  %v1937_v29 = vadd.f32 %v3756_v6, %v1936_v50 }
 0x64b   :  { %1969 = vst [vmem:[#allocation2 + $0xc0] sm:$0xff] %v1937_v29 }
 0x64c   :  { %2654 = shalt.err (!%p2651_p4)
}
 0x64d   :  { %s2667_s26 = smov 128   ;;  %s2668_s27 = smov 8  }
 0x64e   :  { %1982 = dma.vmem_to_hbm [thread:$0]  %s1977_s0, 3328, %s3794_s7, [#allocation3], %s2667_s26, %s2667_s26, %s2668_s27  }
 0x64f   :  { %2663 = dma.done.wait [#allocation3], 3328  }
 0x650   :  { %2664 = vsyncadd [#allocation3], 4294963968 }
 0x651   :  { %1986 = vsyncpa [#allocation3], 1 }

</bundles_post_ra>
